<compile_context>
chip_gen: v7x
topology: tpu7x:2x2x1
jax: 0.10.0
libtpu: 0.0.40
codegen_flags: <defaults>
</compile_context>

<pallas_src>
import jax
import jax.numpy as jnp
from jax.experimental import pallas as pl
from jax.experimental.pallas import tpu as pltpu

HIDDEN_SIZE = 128   # hidden_size
OUTPUT_SIZE = 128   # output_size (vocab)


def _decoder_lstm_kernel(tok_ref, emb_ref, h0_ref, wih_ref, whh_ref, b_ref,
                         wout_ref, bout_ref, logp_ref, hn_ref, x_scr, h_scr):
    T, H = h_scr.shape

    # --- 1. In-kernel embedding gather (off the serial chain, done once). ---
    for t in range(T):                                    # T static -> unrolled
        tok = tok_ref[t]                                  # scalar read from SMEM
        x_scr[pl.ds(t, 1), :] = emb_ref[pl.ds(tok, 1), :]

    # --- 2. Hoisted input-gate matmul at M = T: relu + (T,H) @ (H,3H). -------
    x = jnp.maximum(x_scr[...], 0.0)                      # F.relu, full (T,128) vreg
    xg = jnp.dot(x, wih_ref[...],
                 preferred_element_type=jnp.float32) + b_ref[...]   # (T, 3H)

    # --- 3. Serial recurrence: only the h-dependent half per step. -----------
    h = h0_ref[...]                                       # (1, H)
    for t in range(T):
        gates = xg[t:t + 1, :] + jnp.dot(h, whh_ref[...],
                                         preferred_element_type=jnp.float32)
        i = jax.nn.sigmoid(gates[:, 0 * H:1 * H])
        g = jnp.tanh(gates[:, 1 * H:2 * H])
        o = jax.nn.sigmoid(gates[:, 2 * H:3 * H])
        # Cell state is zero at the start of every step (module semantics),
        # so c1 = f*0 + i*g == i*g and the forget gate is dead.
        h = o * jnp.tanh(i * g)
        h_scr[pl.ds(t, 1), :] = h

    # --- 4. Deferred output projection + batched log-softmax. ----------------
    hs = h_scr[...]                                       # (T, H)
    logits = jnp.dot(hs, wout_ref[...],
                     preferred_element_type=jnp.float32) + bout_ref[...]
    m = jnp.max(logits, axis=-1, keepdims=True)
    z = logits - m
    lse = jnp.log(jnp.sum(jnp.exp(z), axis=-1, keepdims=True))
    logp_ref[...] = z - lse                               # one lane-dense store

    hn_ref[...] = h


def decoder_lstm_decode(tokens, hn, params):
    """Fused T-step decode.

    tokens: (T,) int32 token ids (teacher-forced); hn: (1, 1, H) f32 hidden.
    Returns (logp (T, V), hn (1, 1, H)) — identical to running the PyTorch
    forward T times while threading hn between calls.
    """
    H = HIDDEN_SIZE
    V = OUTPUT_SIZE
    T = int(tokens.shape[0])

    tokens = tokens.astype(jnp.int32)
    h0 = hn.reshape(1, H).astype(jnp.float32)

    vmem = pl.BlockSpec(memory_space=pltpu.MemorySpace.VMEM)
    smem = pl.BlockSpec(memory_space=pltpu.MemorySpace.SMEM)

    logp, hn_new = pl.pallas_call(
        _decoder_lstm_kernel,
        out_shape=(jax.ShapeDtypeStruct((T, V), jnp.float32),
                   jax.ShapeDtypeStruct((1, H), jnp.float32)),
        in_specs=[smem,            # tokens
                  vmem,            # embedding table (V, H)
                  vmem,            # h0 (1, H)
                  vmem, vmem, vmem,  # W_ih^T[igo], W_hh^T[igo], bias[igo]
                  vmem, vmem],       # W_out^T, b_out
        out_specs=(vmem, vmem),
        scratch_shapes=[pltpu.VMEM((T, H), jnp.float32),   # gathered embeddings
                        pltpu.VMEM((T, H), jnp.float32)],  # per-step hidden states
        # Incoming hidden state (input 2) reuses the hn output (output 1) buffer.
        input_output_aliases={2: 1},
    )(tokens, params["embedding"], h0,
      params["w_ih_igo"], params["w_hh_igo"], params["b_igo"],
      params["w_out_t"], params["b_out2d"])

    return logp, hn_new.reshape(1, 1, H)


def decoder_lstm_forward(token, hn, params):
    """Single-step API matching the PyTorch forward: returns (logp (1, V), hn (1, 1, H))."""
    tokens = jnp.reshape(token, (1,)).astype(jnp.int32)
    return decoder_lstm_decode(tokens, hn, params)


def init_params(key, hidden_size, output_size):
    H = hidden_size
    ks = jax.random.split(key, 7)
    s = 1.0 / jnp.sqrt(H)
    # PyTorch layouts pre-transposed: W_ih (4H,H) -> (H,4H), W_hh (4H,H) -> (H,4H).
    w_ih_t = jax.random.uniform(ks[1], (H, 4 * H), jnp.float32, -s, s)
    w_hh_t = jax.random.uniform(ks[2], (H, 4 * H), jnp.float32, -s, s)
    b_ih = jax.random.uniform(ks[3], (4 * H,), jnp.float32, -s, s)
    b_hh = jax.random.uniform(ks[4], (4 * H,), jnp.float32, -s, s)
    b_full = (b_ih + b_hh).reshape(1, 4 * H)

    def igo_cols(w):
        # Drop the dead forget-gate columns (PyTorch gate order is i, f, g, o).
        return jnp.concatenate([w[..., 0 * H:1 * H],
                                w[..., 2 * H:3 * H],
                                w[..., 3 * H:4 * H]], axis=-1)

    return {
        "embedding": jax.random.normal(ks[0], (output_size, H), jnp.float32),
        # Full weights kept only for the pure-JAX reference check.
        "w_ih_t_full": w_ih_t,
        "w_hh_t_full": w_hh_t,
        "b_full": b_full,
        # Kernel weights: forget-gate columns removed, bias pre-summed.
        "w_ih_igo": igo_cols(w_ih_t),                  # (H, 3H)
        "w_hh_igo": igo_cols(w_hh_t),                  # (H, 3H)
        "b_igo": igo_cols(b_full),                     # (1, 3H)
        "w_out_t": jax.random.uniform(ks[5], (H, output_size), jnp.float32, -s, s),
        "b_out2d": jax.random.uniform(ks[6], (output_size,), jnp.float32, -s, s
                                      ).reshape(1, output_size),
    }


def _reference_decode(tokens, hn, params):
    """Pure-JAX reference: apply the PyTorch forward once per token, threading hn.

    Uses the FULL 4-gate weights (including the forget gate) so it also
    validates the dead-forget-gate optimization in the kernel.
    """
    H = HIDDEN_SIZE
    h = hn.reshape(1, H)
    logps = []
    for t in range(int(tokens.shape[0])):
        emb = params["embedding"][tokens[t]].reshape(1, H)
        x = jnp.maximum(emb, 0.0)
        c0 = jnp.zeros((1, H), jnp.float32)            # cn = zeros every forward call
        gates = x @ params["w_ih_t_full"] + h @ params["w_hh_t_full"] + params["b_full"]
        i = jax.nn.sigmoid(gates[:, 0 * H:1 * H])
        f = jax.nn.sigmoid(gates[:, 1 * H:2 * H])
        g = jnp.tanh(gates[:, 2 * H:3 * H])
        o = jax.nn.sigmoid(gates[:, 3 * H:4 * H])
        c1 = f * c0 + i * g
        h = o * jnp.tanh(c1)
        logits = h @ params["w_out_t"] + params["b_out2d"]
        logps.append(jax.nn.log_softmax(logits, axis=1))
    return jnp.concatenate(logps, axis=0), h.reshape(1, 1, H)


if __name__ == "__main__":
    key = jax.random.PRNGKey(0)
    pkey, hkey, tkey = jax.random.split(key, 3)
    params = init_params(pkey, HIDDEN_SIZE, OUTPUT_SIZE)

    T = 8                                              # decode 8 teacher-forced tokens
    tokens = jax.random.randint(tkey, (T,), 0, OUTPUT_SIZE, dtype=jnp.int32)
    hn0 = jax.random.normal(hkey, (1, 1, HIDDEN_SIZE), jnp.float32)

    # Fused multi-step decode (the optimized path).
    logp, hn1 = jax.jit(decoder_lstm_decode)(tokens, hn0, params)
    jax.block_until_ready((logp, hn1))

    ref_logp, ref_hn1 = _reference_decode(tokens, hn0, params)
    assert logp.shape == (T, OUTPUT_SIZE) and hn1.shape == (1, 1, HIDDEN_SIZE)
    assert jnp.allclose(logp, ref_logp, atol=1e-4, rtol=1e-4)
    assert jnp.allclose(hn1, ref_hn1, atol=1e-4, rtol=1e-4)

    # Single-step call with the original module's forward signature.
    logp1, hn_step = jax.jit(decoder_lstm_forward)(tokens[0], hn0, params)
    jax.block_until_ready((logp1, hn_step))
    ref_logp1, ref_hn_step = _reference_decode(tokens[:1], hn0, params)
    assert logp1.shape == (1, OUTPUT_SIZE) and hn_step.shape == (1, 1, HIDDEN_SIZE)
    assert jnp.allclose(logp1, ref_logp1, atol=1e-4, rtol=1e-4)
    assert jnp.allclose(hn_step, ref_hn_step, atol=1e-4, rtol=1e-4)

    print("KERNEL_OK")
</pallas_src>

<mosaic_0001>
module attributes {stable_mosaic.version = 11 : i64} {
  func.func @_decoder_lstm_kernel(%arg0: memref<8xi32, #tpu.memory_space<smem>>, %arg1: memref<128x128xf32, #tpu.memory_space<vmem>>, %arg2: memref<1x128xf32, #tpu.memory_space<vmem>>, %arg3: memref<128x384xf32, #tpu.memory_space<vmem>>, %arg4: memref<128x384xf32, #tpu.memory_space<vmem>>, %arg5: memref<1x384xf32, #tpu.memory_space<vmem>>, %arg6: memref<128x128xf32, #tpu.memory_space<vmem>>, %arg7: memref<1x128xf32, #tpu.memory_space<vmem>>, %arg8: memref<8x128xf32, #tpu.memory_space<vmem>>, %arg9: memref<1x128xf32, #tpu.memory_space<vmem>>, %arg10: memref<8x128xf32, #tpu.memory_space<vmem>>, %arg11: memref<8x128xf32, #tpu.memory_space<vmem>>) attributes {dimension_semantics = [], scalar_prefetch = 0 : i64, scratch_operands = 2 : i64, tpu.core_type = #tpu.core_type<tc>} {
    %c0 = arith.constant 0 : index
    %0 = memref.load %arg0[%c0] : memref<8xi32, #tpu.memory_space<smem>>
    %1 = arith.index_cast %0 : i32 to index
    %c0_0 = arith.constant 0 : index
    %2 = vector.load %arg1[%1, %c0_0] : memref<128x128xf32, #tpu.memory_space<vmem>>, vector<1x128xf32>
    %c0_1 = arith.constant 0 : index
    %c0_2 = arith.constant 0 : index
    %3 = vector.load %arg10[%c0_1, %c0_2] : memref<8x128xf32, #tpu.memory_space<vmem>>, vector<1x128xf32>
    tpu.vector_store %arg10[%c0_1, %c0_2], %2 {strides = array<i32>} : memref<8x128xf32, #tpu.memory_space<vmem>>, vector<1x128xf32>,
    %c1 = arith.constant 1 : index
    %4 = memref.load %arg0[%c1] : memref<8xi32, #tpu.memory_space<smem>>
    %5 = arith.index_cast %4 : i32 to index
    %c0_3 = arith.constant 0 : index
    %6 = vector.load %arg1[%5, %c0_3] : memref<128x128xf32, #tpu.memory_space<vmem>>, vector<1x128xf32>
    %c1_4 = arith.constant 1 : index
    %c0_5 = arith.constant 0 : index
    %7 = vector.load %arg10[%c1_4, %c0_5] : memref<8x128xf32, #tpu.memory_space<vmem>>, vector<1x128xf32>
    tpu.vector_store %arg10[%c1_4, %c0_5], %6 {strides = array<i32>} : memref<8x128xf32, #tpu.memory_space<vmem>>, vector<1x128xf32>,
    %c2 = arith.constant 2 : index
    %8 = memref.load %arg0[%c2] : memref<8xi32, #tpu.memory_space<smem>>
    %9 = arith.index_cast %8 : i32 to index
    %c0_6 = arith.constant 0 : index
    %10 = vector.load %arg1[%9, %c0_6] : memref<128x128xf32, #tpu.memory_space<vmem>>, vector<1x128xf32>
    %c2_7 = arith.constant 2 : index
    %c0_8 = arith.constant 0 : index
    %11 = vector.load %arg10[%c2_7, %c0_8] : memref<8x128xf32, #tpu.memory_space<vmem>>, vector<1x128xf32>
    tpu.vector_store %arg10[%c2_7, %c0_8], %10 {strides = array<i32>} : memref<8x128xf32, #tpu.memory_space<vmem>>, vector<1x128xf32>,
    %c3 = arith.constant 3 : index
    %12 = memref.load %arg0[%c3] : memref<8xi32, #tpu.memory_space<smem>>
    %13 = arith.index_cast %12 : i32 to index
    %c0_9 = arith.constant 0 : index
    %14 = vector.load %arg1[%13, %c0_9] : memref<128x128xf32, #tpu.memory_space<vmem>>, vector<1x128xf32>
    %c3_10 = arith.constant 3 : index
    %c0_11 = arith.constant 0 : index
    %15 = vector.load %arg10[%c3_10, %c0_11] : memref<8x128xf32, #tpu.memory_space<vmem>>, vector<1x128xf32>
    tpu.vector_store %arg10[%c3_10, %c0_11], %14 {strides = array<i32>} : memref<8x128xf32, #tpu.memory_space<vmem>>, vector<1x128xf32>,
    %c4 = arith.constant 4 : index
    %16 = memref.load %arg0[%c4] : memref<8xi32, #tpu.memory_space<smem>>
    %17 = arith.index_cast %16 : i32 to index
    %c0_12 = arith.constant 0 : index
    %18 = vector.load %arg1[%17, %c0_12] : memref<128x128xf32, #tpu.memory_space<vmem>>, vector<1x128xf32>
    %c4_13 = arith.constant 4 : index
    %c0_14 = arith.constant 0 : index
    %19 = vector.load %arg10[%c4_13, %c0_14] : memref<8x128xf32, #tpu.memory_space<vmem>>, vector<1x128xf32>
    tpu.vector_store %arg10[%c4_13, %c0_14], %18 {strides = array<i32>} : memref<8x128xf32, #tpu.memory_space<vmem>>, vector<1x128xf32>,
    %c5 = arith.constant 5 : index
    %20 = memref.load %arg0[%c5] : memref<8xi32, #tpu.memory_space<smem>>
    %21 = arith.index_cast %20 : i32 to index
    %c0_15 = arith.constant 0 : index
    %22 = vector.load %arg1[%21, %c0_15] : memref<128x128xf32, #tpu.memory_space<vmem>>, vector<1x128xf32>
    %c5_16 = arith.constant 5 : index
    %c0_17 = arith.constant 0 : index
    %23 = vector.load %arg10[%c5_16, %c0_17] : memref<8x128xf32, #tpu.memory_space<vmem>>, vector<1x128xf32>
    tpu.vector_store %arg10[%c5_16, %c0_17], %22 {strides = array<i32>} : memref<8x128xf32, #tpu.memory_space<vmem>>, vector<1x128xf32>,
    %c6 = arith.constant 6 : index
    %24 = memref.load %arg0[%c6] : memref<8xi32, #tpu.memory_space<smem>>
    %25 = arith.index_cast %24 : i32 to index
    %c0_18 = arith.constant 0 : index
    %26 = vector.load %arg1[%25, %c0_18] : memref<128x128xf32, #tpu.memory_space<vmem>>, vector<1x128xf32>
    %c6_19 = arith.constant 6 : index
    %c0_20 = arith.constant 0 : index
    %27 = vector.load %arg10[%c6_19, %c0_20] : memref<8x128xf32, #tpu.memory_space<vmem>>, vector<1x128xf32>
    tpu.vector_store %arg10[%c6_19, %c0_20], %26 {strides = array<i32>} : memref<8x128xf32, #tpu.memory_space<vmem>>, vector<1x128xf32>,
    %c7 = arith.constant 7 : index
    %28 = memref.load %arg0[%c7] : memref<8xi32, #tpu.memory_space<smem>>
    %29 = arith.index_cast %28 : i32 to index
    %c0_21 = arith.constant 0 : index
    %30 = vector.load %arg1[%29, %c0_21] : memref<128x128xf32, #tpu.memory_space<vmem>>, vector<1x128xf32>
    %c7_22 = arith.constant 7 : index
    %c0_23 = arith.constant 0 : index
    %31 = vector.load %arg10[%c7_22, %c0_23] : memref<8x128xf32, #tpu.memory_space<vmem>>, vector<1x128xf32>
    tpu.vector_store %arg10[%c7_22, %c0_23], %30 {strides = array<i32>} : memref<8x128xf32, #tpu.memory_space<vmem>>, vector<1x128xf32>,
    %c0_24 = arith.constant 0 : index
    %c0_25 = arith.constant 0 : index
    %32 = vector.load %arg10[%c0_24, %c0_25] : memref<8x128xf32, #tpu.memory_space<vmem>>, vector<8x128xf32>
    %cst = arith.constant 0.000000e+00 : f32
    %33 = vector.broadcast %cst : f32 to vector<8x128xf32>
    %34 = arith.maximumf %32, %33 : vector<8x128xf32>
    %c0_26 = arith.constant 0 : index
    %c0_27 = arith.constant 0 : index
    %35 = vector.load %arg3[%c0_26, %c0_27] : memref<128x384xf32, #tpu.memory_space<vmem>>, vector<128x384xf32>
    %cst_28 = arith.constant dense<0.000000e+00> : vector<8x384xf32>
    %36 = tpu.matmul %34, %35, %cst_28 {dimension_numbers = #tpu.dot_dimension_numbers<[1], [0], [0], [1], [0, 0, 1, 1], [], []>} : vector<8x128xf32>, vector<128x384xf32>, vector<8x384xf32> -> vector<8x384xf32>
    %c0_29 = arith.constant 0 : index
    %c0_30 = arith.constant 0 : index
    %37 = vector.load %arg5[%c0_29, %c0_30] : memref<1x384xf32, #tpu.memory_space<vmem>>, vector<1x384xf32>
    %38 = vector.broadcast %37 : vector<1x384xf32> to vector<8x384xf32>
    %39 = arith.addf %36, %38 : vector<8x384xf32>
    %c0_31 = arith.constant 0 : index
    %c0_32 = arith.constant 0 : index
    %40 = vector.load %arg2[%c0_31, %c0_32] : memref<1x128xf32, #tpu.memory_space<vmem>>, vector<1x128xf32>
    %41 = vector.extract_strided_slice %39 {offsets = [0, 0], sizes = [1, 384], strides = [1, 1]} : vector<8x384xf32> to vector<1x384xf32>
    %c0_33 = arith.constant 0 : index
    %c0_34 = arith.constant 0 : index
    %42 = vector.load %arg4[%c0_33, %c0_34] : memref<128x384xf32, #tpu.memory_space<vmem>>, vector<128x384xf32>
    %cst_35 = arith.constant dense<0.000000e+00> : vector<1x384xf32>
    %43 = tpu.matmul %40, %42, %cst_35 {dimension_numbers = #tpu.dot_dimension_numbers<[1], [0], [0], [1], [0, 0, 1, 1], [], []>} : vector<1x128xf32>, vector<128x384xf32>, vector<1x384xf32> -> vector<1x384xf32>
    %44 = arith.addf %41, %43 : vector<1x384xf32>
    %45 = vector.extract_strided_slice %44 {offsets = [0, 0], sizes = [1, 128], strides = [1, 1]} : vector<1x384xf32> to vector<1x128xf32>
    %46 = arith.negf %45 : vector<1x128xf32>
    %47 = math.exp %46 : vector<1x128xf32>
    %cst_36 = arith.constant 1.000000e+00 : f32
    %48 = vector.broadcast %cst_36 : f32 to vector<1x128xf32>
    %49 = arith.addf %48, %47 : vector<1x128xf32>
    %50 = arith.divf %48, %49 : vector<1x128xf32>
    %51 = vector.extract_strided_slice %44 {offsets = [0, 128], sizes = [1, 128], strides = [1, 1]} : vector<1x384xf32> to vector<1x128xf32>
    %52 = math.tanh %51 : vector<1x128xf32>
    %53 = vector.extract_strided_slice %44 {offsets = [0, 256], sizes = [1, 128], strides = [1, 1]} : vector<1x384xf32> to vector<1x128xf32>
    %54 = arith.negf %53 : vector<1x128xf32>
    %55 = math.exp %54 : vector<1x128xf32>
    %cst_37 = arith.constant 1.000000e+00 : f32
    %56 = vector.broadcast %cst_37 : f32 to vector<1x128xf32>
    %57 = arith.addf %56, %55 : vector<1x128xf32>
    %58 = arith.divf %56, %57 : vector<1x128xf32>
    %59 = arith.mulf %50, %52 : vector<1x128xf32>
    %60 = math.tanh %59 : vector<1x128xf32>
    %61 = arith.mulf %58, %60 : vector<1x128xf32>
    %c0_38 = arith.constant 0 : index
    %c0_39 = arith.constant 0 : index
    %62 = vector.load %arg11[%c0_38, %c0_39] : memref<8x128xf32, #tpu.memory_space<vmem>>, vector<1x128xf32>
    tpu.vector_store %arg11[%c0_38, %c0_39], %61 {strides = array<i32>} : memref<8x128xf32, #tpu.memory_space<vmem>>, vector<1x128xf32>,
    %63 = vector.extract_strided_slice %39 {offsets = [1, 0], sizes = [1, 384], strides = [1, 1]} : vector<8x384xf32> to vector<1x384xf32>
    %c0_40 = arith.constant 0 : index
    %c0_41 = arith.constant 0 : index
    %64 = vector.load %arg4[%c0_40, %c0_41] : memref<128x384xf32, #tpu.memory_space<vmem>>, vector<128x384xf32>
    %cst_42 = arith.constant dense<0.000000e+00> : vector<1x384xf32>
    %65 = tpu.matmul %61, %64, %cst_42 {dimension_numbers = #tpu.dot_dimension_numbers<[1], [0], [0], [1], [0, 0, 1, 1], [], []>} : vector<1x128xf32>, vector<128x384xf32>, vector<1x384xf32> -> vector<1x384xf32>
    %66 = arith.addf %63, %65 : vector<1x384xf32>
    %67 = vector.extract_strided_slice %66 {offsets = [0, 0], sizes = [1, 128], strides = [1, 1]} : vector<1x384xf32> to vector<1x128xf32>
    %68 = arith.negf %67 : vector<1x128xf32>
    %69 = math.exp %68 : vector<1x128xf32>
    %cst_43 = arith.constant 1.000000e+00 : f32
    %70 = vector.broadcast %cst_43 : f32 to vector<1x128xf32>
    %71 = arith.addf %70, %69 : vector<1x128xf32>
    %72 = arith.divf %70, %71 : vector<1x128xf32>
    %73 = vector.extract_strided_slice %66 {offsets = [0, 128], sizes = [1, 128], strides = [1, 1]} : vector<1x384xf32> to vector<1x128xf32>
    %74 = math.tanh %73 : vector<1x128xf32>
    %75 = vector.extract_strided_slice %66 {offsets = [0, 256], sizes = [1, 128], strides = [1, 1]} : vector<1x384xf32> to vector<1x128xf32>
    %76 = arith.negf %75 : vector<1x128xf32>
    %77 = math.exp %76 : vector<1x128xf32>
    %cst_44 = arith.constant 1.000000e+00 : f32
    %78 = vector.broadcast %cst_44 : f32 to vector<1x128xf32>
    %79 = arith.addf %78, %77 : vector<1x128xf32>
    %80 = arith.divf %78, %79 : vector<1x128xf32>
    %81 = arith.mulf %72, %74 : vector<1x128xf32>
    %82 = math.tanh %81 : vector<1x128xf32>
    %83 = arith.mulf %80, %82 : vector<1x128xf32>
    %c1_45 = arith.constant 1 : index
    %c0_46 = arith.constant 0 : index
    %84 = vector.load %arg11[%c1_45, %c0_46] : memref<8x128xf32, #tpu.memory_space<vmem>>, vector<1x128xf32>
    tpu.vector_store %arg11[%c1_45, %c0_46], %83 {strides = array<i32>} : memref<8x128xf32, #tpu.memory_space<vmem>>, vector<1x128xf32>,
    %85 = vector.extract_strided_slice %39 {offsets = [2, 0], sizes = [1, 384], strides = [1, 1]} : vector<8x384xf32> to vector<1x384xf32>
    %c0_47 = arith.constant 0 : index
    %c0_48 = arith.constant 0 : index
    %86 = vector.load %arg4[%c0_47, %c0_48] : memref<128x384xf32, #tpu.memory_space<vmem>>, vector<128x384xf32>
    %cst_49 = arith.constant dense<0.000000e+00> : vector<1x384xf32>
    %87 = tpu.matmul %83, %86, %cst_49 {dimension_numbers = #tpu.dot_dimension_numbers<[1], [0], [0], [1], [0, 0, 1, 1], [], []>} : vector<1x128xf32>, vector<128x384xf32>, vector<1x384xf32> -> vector<1x384xf32>
    %88 = arith.addf %85, %87 : vector<1x384xf32>
    %89 = vector.extract_strided_slice %88 {offsets = [0, 0], sizes = [1, 128], strides = [1, 1]} : vector<1x384xf32> to vector<1x128xf32>
    %90 = arith.negf %89 : vector<1x128xf32>
    %91 = math.exp %90 : vector<1x128xf32>
    %cst_50 = arith.constant 1.000000e+00 : f32
    %92 = vector.broadcast %cst_50 : f32 to vector<1x128xf32>
    %93 = arith.addf %92, %91 : vector<1x128xf32>
    %94 = arith.divf %92, %93 : vector<1x128xf32>
    %95 = vector.extract_strided_slice %88 {offsets = [0, 128], sizes = [1, 128], strides = [1, 1]} : vector<1x384xf32> to vector<1x128xf32>
    %96 = math.tanh %95 : vector<1x128xf32>
    %97 = vector.extract_strided_slice %88 {offsets = [0, 256], sizes = [1, 128], strides = [1, 1]} : vector<1x384xf32> to vector<1x128xf32>
    %98 = arith.negf %97 : vector<1x128xf32>
    %99 = math.exp %98 : vector<1x128xf32>
    %cst_51 = arith.constant 1.000000e+00 : f32
    %100 = vector.broadcast %cst_51 : f32 to vector<1x128xf32>
    %101 = arith.addf %100, %99 : vector<1x128xf32>
    %102 = arith.divf %100, %101 : vector<1x128xf32>
    %103 = arith.mulf %94, %96 : vector<1x128xf32>
    %104 = math.tanh %103 : vector<1x128xf32>
    %105 = arith.mulf %102, %104 : vector<1x128xf32>
    %c2_52 = arith.constant 2 : index
    %c0_53 = arith.constant 0 : index
    %106 = vector.load %arg11[%c2_52, %c0_53] : memref<8x128xf32, #tpu.memory_space<vmem>>, vector<1x128xf32>
    tpu.vector_store %arg11[%c2_52, %c0_53], %105 {strides = array<i32>} : memref<8x128xf32, #tpu.memory_space<vmem>>, vector<1x128xf32>,
    %107 = vector.extract_strided_slice %39 {offsets = [3, 0], sizes = [1, 384], strides = [1, 1]} : vector<8x384xf32> to vector<1x384xf32>
    %c0_54 = arith.constant 0 : index
    %c0_55 = arith.constant 0 : index
    %108 = vector.load %arg4[%c0_54, %c0_55] : memref<128x384xf32, #tpu.memory_space<vmem>>, vector<128x384xf32>
    %cst_56 = arith.constant dense<0.000000e+00> : vector<1x384xf32>
    %109 = tpu.matmul %105, %108, %cst_56 {dimension_numbers = #tpu.dot_dimension_numbers<[1], [0], [0], [1], [0, 0, 1, 1], [], []>} : vector<1x128xf32>, vector<128x384xf32>, vector<1x384xf32> -> vector<1x384xf32>
    %110 = arith.addf %107, %109 : vector<1x384xf32>
    %111 = vector.extract_strided_slice %110 {offsets = [0, 0], sizes = [1, 128], strides = [1, 1]} : vector<1x384xf32> to vector<1x128xf32>
    %112 = arith.negf %111 : vector<1x128xf32>
    %113 = math.exp %112 : vector<1x128xf32>
    %cst_57 = arith.constant 1.000000e+00 : f32
    %114 = vector.broadcast %cst_57 : f32 to vector<1x128xf32>
    %115 = arith.addf %114, %113 : vector<1x128xf32>
    %116 = arith.divf %114, %115 : vector<1x128xf32>
    %117 = vector.extract_strided_slice %110 {offsets = [0, 128], sizes = [1, 128], strides = [1, 1]} : vector<1x384xf32> to vector<1x128xf32>
    %118 = math.tanh %117 : vector<1x128xf32>
    %119 = vector.extract_strided_slice %110 {offsets = [0, 256], sizes = [1, 128], strides = [1, 1]} : vector<1x384xf32> to vector<1x128xf32>
    %120 = arith.negf %119 : vector<1x128xf32>
    %121 = math.exp %120 : vector<1x128xf32>
    %cst_58 = arith.constant 1.000000e+00 : f32
    %122 = vector.broadcast %cst_58 : f32 to vector<1x128xf32>
    %123 = arith.addf %122, %121 : vector<1x128xf32>
    %124 = arith.divf %122, %123 : vector<1x128xf32>
    %125 = arith.mulf %116, %118 : vector<1x128xf32>
    %126 = math.tanh %125 : vector<1x128xf32>
    %127 = arith.mulf %124, %126 : vector<1x128xf32>
    %c3_59 = arith.constant 3 : index
    %c0_60 = arith.constant 0 : index
    %128 = vector.load %arg11[%c3_59, %c0_60] : memref<8x128xf32, #tpu.memory_space<vmem>>, vector<1x128xf32>
    tpu.vector_store %arg11[%c3_59, %c0_60], %127 {strides = array<i32>} : memref<8x128xf32, #tpu.memory_space<vmem>>, vector<1x128xf32>,
    %129 = vector.extract_strided_slice %39 {offsets = [4, 0], sizes = [1, 384], strides = [1, 1]} : vector<8x384xf32> to vector<1x384xf32>
    %c0_61 = arith.constant 0 : index
    %c0_62 = arith.constant 0 : index
    %130 = vector.load %arg4[%c0_61, %c0_62] : memref<128x384xf32, #tpu.memory_space<vmem>>, vector<128x384xf32>
    %cst_63 = arith.constant dense<0.000000e+00> : vector<1x384xf32>
    %131 = tpu.matmul %127, %130, %cst_63 {dimension_numbers = #tpu.dot_dimension_numbers<[1], [0], [0], [1], [0, 0, 1, 1], [], []>} : vector<1x128xf32>, vector<128x384xf32>, vector<1x384xf32> -> vector<1x384xf32>
    %132 = arith.addf %129, %131 : vector<1x384xf32>
    %133 = vector.extract_strided_slice %132 {offsets = [0, 0], sizes = [1, 128], strides = [1, 1]} : vector<1x384xf32> to vector<1x128xf32>
    %134 = arith.negf %133 : vector<1x128xf32>
    %135 = math.exp %134 : vector<1x128xf32>
    %cst_64 = arith.constant 1.000000e+00 : f32
    %136 = vector.broadcast %cst_64 : f32 to vector<1x128xf32>
    %137 = arith.addf %136, %135 : vector<1x128xf32>
    %138 = arith.divf %136, %137 : vector<1x128xf32>
    %139 = vector.extract_strided_slice %132 {offsets = [0, 128], sizes = [1, 128], strides = [1, 1]} : vector<1x384xf32> to vector<1x128xf32>
    %140 = math.tanh %139 : vector<1x128xf32>
    %141 = vector.extract_strided_slice %132 {offsets = [0, 256], sizes = [1, 128], strides = [1, 1]} : vector<1x384xf32> to vector<1x128xf32>
    %142 = arith.negf %141 : vector<1x128xf32>
    %143 = math.exp %142 : vector<1x128xf32>
    %cst_65 = arith.constant 1.000000e+00 : f32
    %144 = vector.broadcast %cst_65 : f32 to vector<1x128xf32>
    %145 = arith.addf %144, %143 : vector<1x128xf32>
    %146 = arith.divf %144, %145 : vector<1x128xf32>
    %147 = arith.mulf %138, %140 : vector<1x128xf32>
    %148 = math.tanh %147 : vector<1x128xf32>
    %149 = arith.mulf %146, %148 : vector<1x128xf32>
    %c4_66 = arith.constant 4 : index
    %c0_67 = arith.constant 0 : index
    %150 = vector.load %arg11[%c4_66, %c0_67] : memref<8x128xf32, #tpu.memory_space<vmem>>, vector<1x128xf32>
    tpu.vector_store %arg11[%c4_66, %c0_67], %149 {strides = array<i32>} : memref<8x128xf32, #tpu.memory_space<vmem>>, vector<1x128xf32>,
    %151 = vector.extract_strided_slice %39 {offsets = [5, 0], sizes = [1, 384], strides = [1, 1]} : vector<8x384xf32> to vector<1x384xf32>
    %c0_68 = arith.constant 0 : index
    %c0_69 = arith.constant 0 : index
    %152 = vector.load %arg4[%c0_68, %c0_69] : memref<128x384xf32, #tpu.memory_space<vmem>>, vector<128x384xf32>
    %cst_70 = arith.constant dense<0.000000e+00> : vector<1x384xf32>
    %153 = tpu.matmul %149, %152, %cst_70 {dimension_numbers = #tpu.dot_dimension_numbers<[1], [0], [0], [1], [0, 0, 1, 1], [], []>} : vector<1x128xf32>, vector<128x384xf32>, vector<1x384xf32> -> vector<1x384xf32>
    %154 = arith.addf %151, %153 : vector<1x384xf32>
    %155 = vector.extract_strided_slice %154 {offsets = [0, 0], sizes = [1, 128], strides = [1, 1]} : vector<1x384xf32> to vector<1x128xf32>
    %156 = arith.negf %155 : vector<1x128xf32>
    %157 = math.exp %156 : vector<1x128xf32>
    %cst_71 = arith.constant 1.000000e+00 : f32
    %158 = vector.broadcast %cst_71 : f32 to vector<1x128xf32>
    %159 = arith.addf %158, %157 : vector<1x128xf32>
    %160 = arith.divf %158, %159 : vector<1x128xf32>
    %161 = vector.extract_strided_slice %154 {offsets = [0, 128], sizes = [1, 128], strides = [1, 1]} : vector<1x384xf32> to vector<1x128xf32>
    %162 = math.tanh %161 : vector<1x128xf32>
    %163 = vector.extract_strided_slice %154 {offsets = [0, 256], sizes = [1, 128], strides = [1, 1]} : vector<1x384xf32> to vector<1x128xf32>
    %164 = arith.negf %163 : vector<1x128xf32>
    %165 = math.exp %164 : vector<1x128xf32>
    %cst_72 = arith.constant 1.000000e+00 : f32
    %166 = vector.broadcast %cst_72 : f32 to vector<1x128xf32>
    %167 = arith.addf %166, %165 : vector<1x128xf32>
    %168 = arith.divf %166, %167 : vector<1x128xf32>
    %169 = arith.mulf %160, %162 : vector<1x128xf32>
    %170 = math.tanh %169 : vector<1x128xf32>
    %171 = arith.mulf %168, %170 : vector<1x128xf32>
    %c5_73 = arith.constant 5 : index
    %c0_74 = arith.constant 0 : index
    %172 = vector.load %arg11[%c5_73, %c0_74] : memref<8x128xf32, #tpu.memory_space<vmem>>, vector<1x128xf32>
    tpu.vector_store %arg11[%c5_73, %c0_74], %171 {strides = array<i32>} : memref<8x128xf32, #tpu.memory_space<vmem>>, vector<1x128xf32>,
    %173 = vector.extract_strided_slice %39 {offsets = [6, 0], sizes = [1, 384], strides = [1, 1]} : vector<8x384xf32> to vector<1x384xf32>
    %c0_75 = arith.constant 0 : index
    %c0_76 = arith.constant 0 : index
    %174 = vector.load %arg4[%c0_75, %c0_76] : memref<128x384xf32, #tpu.memory_space<vmem>>, vector<128x384xf32>
    %cst_77 = arith.constant dense<0.000000e+00> : vector<1x384xf32>
    %175 = tpu.matmul %171, %174, %cst_77 {dimension_numbers = #tpu.dot_dimension_numbers<[1], [0], [0], [1], [0, 0, 1, 1], [], []>} : vector<1x128xf32>, vector<128x384xf32>, vector<1x384xf32> -> vector<1x384xf32>
    %176 = arith.addf %173, %175 : vector<1x384xf32>
    %177 = vector.extract_strided_slice %176 {offsets = [0, 0], sizes = [1, 128], strides = [1, 1]} : vector<1x384xf32> to vector<1x128xf32>
    %178 = arith.negf %177 : vector<1x128xf32>
    %179 = math.exp %178 : vector<1x128xf32>
    %cst_78 = arith.constant 1.000000e+00 : f32
    %180 = vector.broadcast %cst_78 : f32 to vector<1x128xf32>
    %181 = arith.addf %180, %179 : vector<1x128xf32>
    %182 = arith.divf %180, %181 : vector<1x128xf32>
    %183 = vector.extract_strided_slice %176 {offsets = [0, 128], sizes = [1, 128], strides = [1, 1]} : vector<1x384xf32> to vector<1x128xf32>
    %184 = math.tanh %183 : vector<1x128xf32>
    %185 = vector.extract_strided_slice %176 {offsets = [0, 256], sizes = [1, 128], strides = [1, 1]} : vector<1x384xf32> to vector<1x128xf32>
    %186 = arith.negf %185 : vector<1x128xf32>
    %187 = math.exp %186 : vector<1x128xf32>
    %cst_79 = arith.constant 1.000000e+00 : f32
    %188 = vector.broadcast %cst_79 : f32 to vector<1x128xf32>
    %189 = arith.addf %188, %187 : vector<1x128xf32>
    %190 = arith.divf %188, %189 : vector<1x128xf32>
    %191 = arith.mulf %182, %184 : vector<1x128xf32>
    %192 = math.tanh %191 : vector<1x128xf32>
    %193 = arith.mulf %190, %192 : vector<1x128xf32>
    %c6_80 = arith.constant 6 : index
    %c0_81 = arith.constant 0 : index
    %194 = vector.load %arg11[%c6_80, %c0_81] : memref<8x128xf32, #tpu.memory_space<vmem>>, vector<1x128xf32>
    tpu.vector_store %arg11[%c6_80, %c0_81], %193 {strides = array<i32>} : memref<8x128xf32, #tpu.memory_space<vmem>>, vector<1x128xf32>,
    %195 = vector.extract_strided_slice %39 {offsets = [7, 0], sizes = [1, 384], strides = [1, 1]} : vector<8x384xf32> to vector<1x384xf32>
    %c0_82 = arith.constant 0 : index
    %c0_83 = arith.constant 0 : index
    %196 = vector.load %arg4[%c0_82, %c0_83] : memref<128x384xf32, #tpu.memory_space<vmem>>, vector<128x384xf32>
    %cst_84 = arith.constant dense<0.000000e+00> : vector<1x384xf32>
    %197 = tpu.matmul %193, %196, %cst_84 {dimension_numbers = #tpu.dot_dimension_numbers<[1], [0], [0], [1], [0, 0, 1, 1], [], []>} : vector<1x128xf32>, vector<128x384xf32>, vector<1x384xf32> -> vector<1x384xf32>
    %198 = arith.addf %195, %197 : vector<1x384xf32>
    %199 = vector.extract_strided_slice %198 {offsets = [0, 0], sizes = [1, 128], strides = [1, 1]} : vector<1x384xf32> to vector<1x128xf32>
    %200 = arith.negf %199 : vector<1x128xf32>
    %201 = math.exp %200 : vector<1x128xf32>
    %cst_85 = arith.constant 1.000000e+00 : f32
    %202 = vector.broadcast %cst_85 : f32 to vector<1x128xf32>
    %203 = arith.addf %202, %201 : vector<1x128xf32>
    %204 = arith.divf %202, %203 : vector<1x128xf32>
    %205 = vector.extract_strided_slice %198 {offsets = [0, 128], sizes = [1, 128], strides = [1, 1]} : vector<1x384xf32> to vector<1x128xf32>
    %206 = math.tanh %205 : vector<1x128xf32>
    %207 = vector.extract_strided_slice %198 {offsets = [0, 256], sizes = [1, 128], strides = [1, 1]} : vector<1x384xf32> to vector<1x128xf32>
    %208 = arith.negf %207 : vector<1x128xf32>
    %209 = math.exp %208 : vector<1x128xf32>
    %cst_86 = arith.constant 1.000000e+00 : f32
    %210 = vector.broadcast %cst_86 : f32 to vector<1x128xf32>
    %211 = arith.addf %210, %209 : vector<1x128xf32>
    %212 = arith.divf %210, %211 : vector<1x128xf32>
    %213 = arith.mulf %204, %206 : vector<1x128xf32>
    %214 = math.tanh %213 : vector<1x128xf32>
    %215 = arith.mulf %212, %214 : vector<1x128xf32>
    %c7_87 = arith.constant 7 : index
    %c0_88 = arith.constant 0 : index
    %216 = vector.load %arg11[%c7_87, %c0_88] : memref<8x128xf32, #tpu.memory_space<vmem>>, vector<1x128xf32>
    tpu.vector_store %arg11[%c7_87, %c0_88], %215 {strides = array<i32>} : memref<8x128xf32, #tpu.memory_space<vmem>>, vector<1x128xf32>,
    %c0_89 = arith.constant 0 : index
    %c0_90 = arith.constant 0 : index
    %217 = vector.load %arg11[%c0_89, %c0_90] : memref<8x128xf32, #tpu.memory_space<vmem>>, vector<8x128xf32>
    %c0_91 = arith.constant 0 : index
    %c0_92 = arith.constant 0 : index
    %218 = vector.load %arg6[%c0_91, %c0_92] : memref<128x128xf32, #tpu.memory_space<vmem>>, vector<128x128xf32>
    %cst_93 = arith.constant dense<0.000000e+00> : vector<8x128xf32>
    %219 = tpu.matmul %217, %218, %cst_93 {dimension_numbers = #tpu.dot_dimension_numbers<[1], [0], [0], [1], [0, 0, 1, 1], [], []>} : vector<8x128xf32>, vector<128x128xf32>, vector<8x128xf32> -> vector<8x128xf32>
    %c0_94 = arith.constant 0 : index
    %c0_95 = arith.constant 0 : index
    %220 = vector.load %arg7[%c0_94, %c0_95] : memref<1x128xf32, #tpu.memory_space<vmem>>, vector<1x128xf32>
    %221 = vector.broadcast %220 : vector<1x128xf32> to vector<8x128xf32>
    %222 = arith.addf %219, %221 : vector<8x128xf32>
    %cst_96 = arith.constant dense<0xFF800000> : vector<8xf32>
    %223 = vector.multi_reduction <maximumf>, %222, %cst_96 [1] : vector<8x128xf32> to vector<8xf32>
    %224 = vector.shape_cast %223 : vector<8xf32> to vector<8x1xf32>
    %225 = vector.broadcast %224 : vector<8x1xf32> to vector<8x128xf32>
    %226 = arith.subf %222, %225 : vector<8x128xf32>
    %227 = math.exp %226 : vector<8x128xf32>
    %cst_97 = arith.constant dense<0.000000e+00> : vector<8xf32>
    %228 = vector.multi_reduction <add>, %227, %cst_97 [1] : vector<8x128xf32> to vector<8xf32>
    %229 = vector.shape_cast %228 : vector<8xf32> to vector<8x1xf32>
    %230 = math.log %229 : vector<8x1xf32>
    %231 = vector.broadcast %230 : vector<8x1xf32> to vector<8x128xf32>
    %232 = arith.subf %226, %231 : vector<8x128xf32>
    %c0_98 = arith.constant 0 : index
    %c0_99 = arith.constant 0 : index
    %233 = vector.load %arg8[%c0_98, %c0_99] : memref<8x128xf32, #tpu.memory_space<vmem>>, vector<8x128xf32>
    tpu.vector_store %arg8[%c0_98, %c0_99], %232 {strides = array<i32>} : memref<8x128xf32, #tpu.memory_space<vmem>>, vector<8x128xf32>,
    %c0_100 = arith.constant 0 : index
    %c0_101 = arith.constant 0 : index
    %234 = vector.load %arg9[%c0_100, %c0_101] : memref<1x128xf32, #tpu.memory_space<vmem>>, vector<1x128xf32>
    tpu.vector_store %arg9[%c0_100, %c0_101], %215 {strides = array<i32>} : memref<1x128xf32, #tpu.memory_space<vmem>>, vector<1x128xf32>,
    return
  }
}

</mosaic_0001>

<bundles_post_ra>
// kernel: decoder_lstm_decode.1
= control target key start
LH: loop header
LB: loop body
LE: loop exit
PB: predicated region body
PF: predicated region fallthrough
CT: control target
= control target key end

     0   :  { %15 = vsyncpa [#allocation7], 0  ;;  %s4148_s0 = inlined_call_operand.vmem [shape: s32[8], index: 0, kind: input, shape index: {}]   ;;  %s4149_s1 = inlined_call_operand.hbm [shape: f32[128,128], index: 1, kind: input, shape index: {}]   ;;  %s4150_s2 = inlined_call_operand.vmem [shape: f32[1,128], index: 2, kind: input, shape index: {}, may-alias: {2,9}]   ;;  %s4151_s3 = inlined_call_operand.hbm [shape: f32[128,384], index: 3, kind: input, shape index: {}]   ;;  %s4152_s4 = inlined_call_operand.hbm [shape: f32[128,384], index: 4, kind: input, shape index: {}]   ;;  %s4153_s5 = inlined_call_operand.vmem [shape: f32[1,384], index: 5, kind: input, shape index: {}]   ;;  %s4154_s6 = inlined_call_operand.hbm [shape: f32[128,128], index: 6, kind: input, shape index: {}]   ;;  %s4155_s7 = inlined_call_operand.vmem [shape: f32[1,128], index: 7, kind: input, shape index: {}]   ;;  %s4156_s8 = inlined_call_operand.hbm [shape: f32[8,128], index: 8, kind: output, shape index: {0}]   ;;  %s4157_s9 = inlined_call_operand.vmem [shape: f32[1,128], index: 9, kind: output, shape index: {1}, may-alias: {2,9}]  }
   0x1   :  { %16 = vsyncpa [#allocation5], 0 }
   0x2   :  { %17 = vsyncpa [#allocation10], 0 }
   0x3   :  { %18 = vsyncpa [#allocation13], 0 }
   0x4   :  { %19 = vsyncpa [#allocation6], 0  ;;  %s3547_s30 = smov [#allocation9]   ;;  %s26_s13 = sshll.u32 %s4148_s0, 4  ;;  %s27_s13 = int_to_ptr.vmem [resolvable:$true] %s26_s13 }
   0x5   :  { %s49_s10 = sshll.u32 %s3547_s30, 4  ;;  %s3415_s16 = scalar_lea.hbm %s4151_s3, 6144  ;;  %s50_s10 = int_to_ptr.vmem [resolvable:$true] %s49_s10 }
   0x6   :  { %p3416_p0 = scmp.ne.s32.totalorder %s4151_s3, %s3415_s16  ;;  %p3419_p1 = scmp.lt.u32.totalorder %s3415_s16, %s4151_s3 }
   0x8   :  { %p3421_p2 = pnand %p3419_p1, %p3416_p0 }
   0xa   :  { %3424 = shalt.err (!%p3421_p2)
}
   0xb   :  { %s3425_s21 = scalar_lea.vmem %s50_s10, 6144  ;;  %p3430_p4 = scmp.lt.s32.totalorder %s50_s10, %s50_s10 }
   0xc   :  { %p3426_p3 = scmp.ne.s32.totalorder %s50_s10, %s3425_s21  ;;  %p3431_p5 = scmp.lt.s32.totalorder %s3425_s21, %s3425_s21 }
   0xe   :  { %p3432_p6 = por %p3431_p5, %p3430_p4 }
  0x10   :  { %p3433_p7 = pnand %p3432_p6, %p3426_p3 }
  0x12   :  { %3436 = shalt.err (!%p3433_p7)
}
  0x13   :  { %s3548_s0 = smov 384   ;;  %s3549_s22 = smov 24  }
  0x14   :  { %55 = dma.hbm_to_vmem [thread:$0]  %s4151_s3, 6144, %s50_s10, [#allocation10], %s3548_s0, %s3548_s0, %s3549_s22  }
  0x15   :  { %s3437_s25 = scalar_lea.vmem %s27_s13, 16  ;;  %p3442_p9 = scmp.lt.s32.totalorder %s27_s13, %s27_s13 }
  0x16   :  { %p3438_p8 = scmp.ne.s32.totalorder %s27_s13, %s3437_s25  ;;  %p3443_p10 = scmp.lt.s32.totalorder %s3437_s25, %s3437_s25 }
  0x18   :  { %p3444_p11 = por %p3443_p10, %p3442_p9 }
  0x1a   :  { %p3445_p12 = pnand %p3444_p11, %p3438_p8 }
  0x1c   :  { %3448 = shalt.err (!%p3445_p12)
}
  0x1d   :  { %s3550_s26 = smov [#allocation4]   ;;  %s3551_s27 = smov [#allocation8]  }
  0x1e   :  { %29 = dma.vmem_to_smem %s27_s13, 16, %s3550_s26, [#allocation7]  }
  0x1f   :  { %s35_s28 = sshll.u32 %s3551_s27, 4  ;;  %s3449_s11 = scalar_lea.hbm %s4149_s1, 2048  ;;  %s36_s28 = int_to_ptr.vmem [resolvable:$true] %s35_s28 }
  0x20   :  { %p3450_p13 = scmp.ne.s32.totalorder %s4149_s1, %s3449_s11  ;;  %p3453_p0 = scmp.lt.u32.totalorder %s3449_s11, %s4149_s1 }
  0x22   :  { %p3455_p1 = pnand %p3453_p0, %p3450_p13 }
  0x24   :  { %3458 = shalt.err (!%p3455_p1)
}
  0x25   :  { %s3459_s15 = scalar_lea.vmem %s36_s28, 2048  ;;  %p3464_p3 = scmp.lt.s32.totalorder %s36_s28, %s36_s28 }
  0x26   :  { %p3460_p2 = scmp.ne.s32.totalorder %s36_s28, %s3459_s15  ;;  %p3465_p4 = scmp.lt.s32.totalorder %s3459_s15, %s3459_s15 }
  0x28   :  { %p3466_p5 = por %p3465_p4, %p3464_p3 }
  0x2a   :  { %p3467_p6 = pnand %p3466_p5, %p3460_p2 }
  0x2c   :  { %3470 = shalt.err (!%p3467_p6)
}
  0x2d   :  { %s3552_s13 = smov 128   ;;  %s3553_s16 = smov 8  }
  0x2e   :  { %41 = dma.hbm_to_vmem [thread:$0]  %s4149_s1, 2048, %s36_s28, [#allocation5], %s3552_s13, %s3552_s13, %s3553_s16  }
  0x2f   :  { %s3554_s19 = smov [#allocation11]   ;;  %s3555_s21 = smov [#allocation12]  }
  0x30   :  { %s61_s20 = sshll.u32 %s3554_s19, 4  ;;  %s75_s23 = sshll.u32 %s3555_s21, 4  ;;  %s62_s20 = int_to_ptr.vmem [resolvable:$true] %s61_s20  ;;  %s76_s23 = int_to_ptr.vmem [resolvable:$true] %s75_s23 }
  0x31   :  { %s3471_s26 = scalar_lea.hbm %s4152_s4, 6144 }
  0x32   :  { %p3472_p7 = scmp.ne.s32.totalorder %s4152_s4, %s3471_s26  ;;  %p3475_p8 = scmp.lt.u32.totalorder %s3471_s26, %s4152_s4 }
  0x34   :  { %p3477_p9 = pnand %p3475_p8, %p3472_p7 }
  0x36   :  { %3480 = shalt.err (!%p3477_p9)
}
  0x37   :  { %s3481_s1 = scalar_lea.vmem %s62_s20, 6144  ;;  %p3486_p11 = scmp.lt.s32.totalorder %s62_s20, %s62_s20 }
  0x38   :  { %p3482_p10 = scmp.ne.s32.totalorder %s62_s20, %s3481_s1  ;;  %p3487_p12 = scmp.lt.s32.totalorder %s3481_s1, %s3481_s1 }
  0x3a   :  { %p3488_p13 = por %p3487_p12, %p3486_p11 }
  0x3c   :  { %p3489_p0 = pnand %p3488_p13, %p3482_p10 }
  0x3e   :  { %3492 = shalt.err (!%p3489_p0)
}
  0x3f   :  { %67 = dma.hbm_to_vmem [thread:$0]  %s4152_s4, 6144, %s62_s20, [#allocation10], %s3548_s0, %s3548_s0, %s3549_s22  }
  0x40   :  { %s3493_s10 = scalar_lea.hbm %s4154_s6, 2048 }
  0x41   :  { %p3494_p1 = scmp.ne.s32.totalorder %s4154_s6, %s3493_s10  ;;  %p3497_p2 = scmp.lt.u32.totalorder %s3493_s10, %s4154_s6 }
  0x43   :  { %p3499_p3 = pnand %p3497_p2, %p3494_p1 }
  0x45   :  { %3502 = shalt.err (!%p3499_p3)
}
  0x46   :  { %s3503_s21 = scalar_lea.vmem %s76_s23, 2048  ;;  %p3508_p5 = scmp.lt.s32.totalorder %s76_s23, %s76_s23 }
  0x47   :  { %p3504_p4 = scmp.ne.s32.totalorder %s76_s23, %s3503_s21  ;;  %p3509_p6 = scmp.lt.s32.totalorder %s3503_s21, %s3503_s21 }
  0x49   :  { %p3510_p7 = por %p3509_p6, %p3508_p5 }
  0x4b   :  { %p3511_p8 = pnand %p3510_p7, %p3504_p4 }
  0x4d   :  { %3514 = shalt.err (!%p3511_p8)
}
  0x4e   :  { %81 = dma.hbm_to_vmem [thread:$0]  %s4154_s6, 2048, %s76_s23, [#allocation13], %s3552_s13, %s3552_s13, %s3553_s16  }
  0x4f   :  { %3537 = dma.done.wait [#allocation7], 16  }
  0x50   :  { %3538 = vsyncadd [#allocation7], 4294967280 }
  0x51   :  { %3539 = dma.done.wait [#allocation5], 2048  }
  0x52   :  { %3540 = vsyncadd [#allocation5], 4294965248 }
  0x53   :  { %3541 = dma.done.wait [#allocation10], 12288  }
  0x54   :  { %3542 = vsyncadd [#allocation10], 4294955008 }
  0x55   :  { %3543 = dma.done.wait [#allocation13], 2048  }
  0x56   :  { %3544 = vsyncadd [#allocation13], 4294965248 }
  0x57   :  { %99 = sfence }
  0x58   :  { %v135_v0 = vld [vmem:[#allocation9 + $0x8] sm:$0xff]  ;;  %v138_v1 = vld [vmem:[#allocation9 + $0x20] sm:$0xff]  ;;  %v136_v2 = vld [vmem:[#allocation9 + $0x10] sm:$0xff]  ;;  %v3556_v3 = vmov 0.0|0.0   ;;  %v3557_v8 = vmov 0.0   ;;  %vm3558_vm0 = vmmov 0  }
  0x59   :  { %2806 = vmatprep.subr.bf16.mxu1 %v3556_v3  ;;  %v2774_v4 = vpack.c.bf16 %v138_v1, %v135_v0  ;;  %v139_v5 = vld [vmem:[#allocation9 + $0x28] sm:$0xff]  ;;  %v134_v6 = vld [vmem:[#allocation9] sm:$0xff]  ;;  %v137_v7 = vld [vmem:[#allocation9 + $0x18] sm:$0xff]  ;;  %263 = vmatprep.mubr.f32.mxu0 %v3557_v8  ;;  %s3677_s6 = sld [smem:[#allocation4]]  ;;  %s3679_s22 = sld [smem:[#allocation4 + $0x1]] }
  0x5a   :  { %v2807_v9 = vpack.c.bf16 %v139_v5, %v136_v2  ;;  %v2776_v10 = vpack.c.bf16 %v137_v7, %v134_v6  ;;  %v141_v11 = vld [vmem:[#allocation9 + $0x38] sm:$0xff]  ;;  %v144_v12 = vld [vmem:[#allocation9 + $0x50] sm:$0xff]  ;;  %v142_v13 = vld [vmem:[#allocation9 + $0x40] sm:$0xff]  ;;  %2456 = vmatprep.mubr.msk.f32.mxu1 %vm3558_vm0, %v3557_v8  ;;  %s3681_s13 = sld [smem:[#allocation4 + $0x2]]  ;;  %s3684_s16 = sld [smem:[#allocation4 + $0x3]] }
  0x5b   :  { %2775 = vmatprep.subr.bf16.mxu0 %v2774_v4  ;;  %v2778_v14 = vpack.c.bf16 %v144_v12, %v141_v11  ;;  %v145_v15 = vld [vmem:[#allocation9 + $0x58] sm:$0xff]  ;;  %v140_v16 = vld [vmem:[#allocation9 + $0x30] sm:$0xff]  ;;  %v143_v17 = vld [vmem:[#allocation9 + $0x48] sm:$0xff]  ;;  %s3686_s20 = sld [smem:[#allocation4 + $0x4]]  ;;  %s3688_s23 = sld [smem:[#allocation4 + $0x5]] }
  0x5c   :  { %2808 = vmatpush3.bf16.msra.mxu1 %v2807_v9  ;;  %2777 = vmatpush1.bf16.msra.mxu0 %v2776_v10  ;;  %v2810_v18 = vpack.c.bf16 %v145_v15, %v142_v13  ;;  %v2780_v19 = vpack.c.bf16 %v143_v17, %v140_v16  ;;  %v147_v20 = vld [vmem:[#allocation9 + $0x68] sm:$0xff]  ;;  %v150_v21 = vld [vmem:[#allocation9 + $0x80] sm:$0xff]  ;;  %v148_v22 = vld [vmem:[#allocation9 + $0x70] sm:$0xff]  ;;  %s3690_s24 = sld [smem:[#allocation4 + $0x6]]  ;;  %s3692_s25 = sld [smem:[#allocation4 + $0x7]] }
  0x5d   :  { %2809 = vmatprep.subr.bf16.mxu1 %v3556_v3  ;;  %2779 = vmatprep.subr.bf16.mxu0 %v2778_v14  ;;  %v2782_v23 = vpack.c.bf16 %v150_v21, %v147_v20  ;;  %v151_v24 = vld [vmem:[#allocation9 + $0x88] sm:$0xff]  ;;  %v146_v25 = vld [vmem:[#allocation9 + $0x60] sm:$0xff]  ;;  %v149_v26 = vld [vmem:[#allocation9 + $0x78] sm:$0xff] }
  0x5e   :  { %v153_v27 = vld [vmem:[#allocation9 + $0x98] sm:$0xff]  ;;  %v156_v28 = vld [vmem:[#allocation9 + $0xb0] sm:$0xff]  ;;  %v2813_v29 = vpack.c.bf16 %v151_v24, %v148_v22  ;;  %v2784_v30 = vpack.c.bf16 %v149_v26, %v146_v25  ;;  %v154_v31 = vld [vmem:[#allocation9 + $0xa0] sm:$0xff] }
  0x5f   :  { %v2786_v32 = vpack.c.bf16 %v156_v28, %v153_v27  ;;  %v157_v33 = vld [vmem:[#allocation9 + $0xb8] sm:$0xff]  ;;  %v152_v34 = vld [vmem:[#allocation9 + $0x90] sm:$0xff]  ;;  %v155_v35 = vld [vmem:[#allocation9 + $0xa8] sm:$0xff]  ;;  %s101_s26 = scalar_lea.vmem [#allocation8], %s3677_s6  ;;  %s105_s27 = scalar_lea.vmem [#allocation8], %s3679_s22 }
  0x60   :  { %2811 = vmatpush3.bf16.msra.mxu1 %v2810_v18  ;;  %2781 = vmatpush1.bf16.msra.mxu0 %v2780_v19  ;;  %v159_v36 = vld [vmem:[#allocation9 + $0xc8] sm:$0xff]  ;;  %v162_v37 = vld [vmem:[#allocation9 + $0xe0] sm:$0xff]  ;;  %v2816_v38 = vpack.c.bf16 %v157_v33, %v154_v31  ;;  %v2788_v39 = vpack.c.bf16 %v155_v35, %v152_v34  ;;  %v160_v40 = vld [vmem:[#allocation9 + $0xd0] sm:$0xff]  ;;  %s109_s29 = scalar_lea.vmem [#allocation8], %s3681_s13  ;;  %s113_s30 = scalar_lea.vmem [#allocation8], %s3684_s16 }
  0x61   :  { %2812 = vmatprep.subr.bf16.mxu1 %v3556_v3  ;;  %2783 = vmatprep.subr.bf16.mxu0 %v2782_v23  ;;  %v2790_v41 = vpack.c.bf16 %v162_v37, %v159_v36  ;;  %v163_v42 = vld [vmem:[#allocation9 + $0xe8] sm:$0xff]  ;;  %v158_v43 = vld [vmem:[#allocation9 + $0xc0] sm:$0xff]  ;;  %v161_v44 = vld [vmem:[#allocation9 + $0xd8] sm:$0xff]  ;;  %s117_s11 = scalar_lea.vmem [#allocation8], %s3686_s20  ;;  %s121_s1 = scalar_lea.vmem [#allocation8], %s3688_s23 }
  0x62   :  { %v165_v45 = vld [vmem:[#allocation9 + $0xf8] sm:$0xff]  ;;  %v168_v46 = vld [vmem:[#allocation9 + $0x110] sm:$0xff]  ;;  %v166_v47 = vld [vmem:[#allocation9 + $0x100] sm:$0xff]  ;;  %v2819_v51 = vpack.c.bf16 %v163_v42, %v160_v40  ;;  %v2792_v52 = vpack.c.bf16 %v161_v44, %v158_v43  ;;  %s125_s28 = scalar_lea.vmem [#allocation8], %s3690_s24  ;;  %s129_s12 = scalar_lea.vmem [#allocation8], %s3692_s25 }
  0x63   :  { %v169_v48 = vld [vmem:[#allocation9 + $0x118] sm:$0xff]  ;;  %v164_v49 = vld [vmem:[#allocation9 + $0xf0] sm:$0xff]  ;;  %v167_v50 = vld [vmem:[#allocation9 + $0x108] sm:$0xff]  ;;  %v2794_v57 = vpack.c.bf16 %v168_v46, %v165_v45 }
  0x64   :  { %2814 = vmatpush3.bf16.msra.mxu1 %v2813_v29  ;;  %2785 = vmatpush1.bf16.msra.mxu0 %v2784_v30  ;;  %v171_v53 = vld [vmem:[#allocation9 + $0x128] sm:$0xff]  ;;  %v102_v54 = vld [vmem:[%s101_s26] sm:$0x1]  ;;  %v174_v61 = vld [vmem:[#allocation9 + $0x140] sm:$0xff]  ;;  %v2822_v0 = vpack.c.bf16 %v169_v48, %v166_v47  ;;  %v2796_v1 = vpack.c.bf16 %v167_v50, %v164_v49 }
  0x65   :  { %2815 = vmatprep.subr.bf16.mxu1 %v3556_v3  ;;  %2787 = vmatprep.subr.bf16.mxu0 %v2786_v32  ;;  %v106_v55 = vld [vmem:[%s105_s27] sm:$0x1]  ;;  %103 = vst [vmem:[#allocation2] sm:$0x1] %v102_v54  ;;  %v2798_v4 = vpack.c.bf16 %v174_v61, %v171_v53  ;;  %v175_v5 = vld [vmem:[#allocation9 + $0x148] sm:$0xff]  ;;  %v170_v6 = vld [vmem:[#allocation9 + $0x120] sm:$0xff] }
  0x66   :  { %v110_v56 = vld [vmem:[%s109_s29] sm:$0x1]  ;;  %107 = vst [vmem:[#allocation2 + $0x1] sm:$0x1] %v106_v55  ;;  %v173_v7 = vld [vmem:[#allocation9 + $0x138] sm:$0xff]  ;;  %v178_v13 = vld [vmem:[#allocation9 + $0x160] sm:$0xff] }
  0x67   :  { %111 = vst [vmem:[#allocation2 + $0x2] sm:$0x1] %v110_v56  ;;  %v114_v58 = vld [vmem:[%s113_s30] sm:$0x1]  ;;  %v177_v9 = vld [vmem:[#allocation9 + $0x158] sm:$0xff]  ;;  %v2800_v12 = vpack.c.bf16 %v173_v7, %v170_v6  ;;  %v179_v17 = vld [vmem:[#allocation9 + $0x168] sm:$0xff] }
  0x68   :  { %2817 = vmatpush3.bf16.msra.mxu1 %v2816_v38  ;;  %2789 = vmatpush1.bf16.msra.mxu0 %v2788_v39  ;;  %v118_v59 = vld [vmem:[%s117_s11] sm:$0x1]  ;;  %115 = vst [vmem:[#allocation2 + $0x3] sm:$0x1] %v114_v58  ;;  %v181_v15 = vld [vmem:[#allocation9 + $0x178] sm:$0xff]  ;;  %v342_v18 = vld [vmem:[#allocation11 + $0x8] sm:$0xff] }
  0x69   :  { %2818 = vmatprep.subr.bf16.mxu1 %v3556_v3  ;;  %2791 = vmatprep.subr.bf16.mxu0 %v2790_v41  ;;  %v122_v60 = vld [vmem:[%s121_s1] sm:$0x1]  ;;  %119 = vst [vmem:[#allocation2 + $0x4] sm:$0x1] %v118_v59  ;;  %v345_v19 = vld [vmem:[#allocation11 + $0x20] sm:$0xff]  ;;  %v2828_v20 = vpack.c.bf16 %v181_v15, %v178_v13  ;;  %v346_v25 = vld [vmem:[#allocation11 + $0x28] sm:$0xff] }
  0x6a   :  { %123 = vst [vmem:[#allocation2 + $0x5] sm:$0x1] %v122_v60  ;;  %v126_v62 = vld [vmem:[%s125_s28] sm:$0x1]  ;;  %v3708_v24 = vpack.c.bf16 %v345_v19, %v342_v18  ;;  %v341_v26 = vld [vmem:[#allocation11] sm:$0xff]  ;;  %v344_v27 = vld [vmem:[#allocation11 + $0x18] sm:$0xff] }
  0x6b   :  { %v130_v63 = vld [vmem:[%s129_s12] sm:$0x1]  ;;  %127 = vst [vmem:[#allocation2 + $0x6] sm:$0x1] %v126_v62  ;;  %v348_v28 = vld [vmem:[#allocation11 + $0x38] sm:$0xff]  ;;  %v3712_v32 = vpack.c.bf16 %v344_v27, %v341_v26  ;;  %v349_v33 = vld [vmem:[#allocation11 + $0x40] sm:$0xff] }
  0x6c   :  { %131 = vst [vmem:[#allocation2 + $0x7] sm:$0x1] %v130_v63  ;;  %2820 = vmatpush3.bf16.msra.mxu1 %v2819_v51  ;;  %2793 = vmatpush1.bf16.msra.mxu0 %v2792_v52  ;;  %v172_v2 = vld [vmem:[#allocation9 + $0x130] sm:$0xff]  ;;  %v352_v35 = vld [vmem:[#allocation11 + $0x58] sm:$0xff]  ;;  %v350_v37 = vld [vmem:[#allocation11 + $0x48] sm:$0xff] }
  0x6d   :  { %2821 = vmatprep.subr.bf16.mxu1 %v3556_v3  ;;  %2795 = vmatprep.subr.bf16.mxu0 %v2794_v57  ;;  %v180_v10 = vld [vmem:[#allocation9 + $0x170] sm:$0xff]  ;;  %v2825_v11 = vpack.c.bf16 %v175_v5, %v172_v2  ;;  %v354_v38 = vld [vmem:[#allocation11 + $0x68] sm:$0xff]  ;;  %v357_v39 = vld [vmem:[#allocation11 + $0x80] sm:$0xff]  ;;  %v3720_v40 = vpack.c.bf16 %v352_v35, %v349_v33 }
  0x6e   :  { %v2802_v14 = vpack.c.bf16 %v180_v10, %v177_v9  ;;  %v176_v16 = vld [vmem:[#allocation9 + $0x150] sm:$0xff]  ;;  %v3726_v43 = vpack.c.bf16 %v357_v39, %v354_v38  ;;  %v358_v44 = vld [vmem:[#allocation11 + $0x88] sm:$0xff]  ;;  %v353_v45 = vld [vmem:[#allocation11 + $0x60] sm:$0xff] }
  0x6f   :  { %v2804_v21 = vpack.c.bf16 %v179_v17, %v176_v16  ;;  %v343_v23 = vld [vmem:[#allocation11 + $0x10] sm:$0xff]  ;;  %v356_v46 = vld [vmem:[#allocation11 + $0x78] sm:$0xff]  ;;  %v361_v51 = vld [vmem:[#allocation11 + $0xa0] sm:$0xff] }
  0x70   :  { %2823 = vmatpush3.bf16.msra.mxu1 %v2822_v0  ;;  %2797 = vmatpush1.bf16.msra.mxu0 %v2796_v1  ;;  %v351_v29 = vld [vmem:[#allocation11 + $0x50] sm:$0xff]  ;;  %v3710_v31 = vpack.c.bf16 %v346_v25, %v343_v23  ;;  %v360_v47 = vld [vmem:[#allocation11 + $0x98] sm:$0xff]  ;;  %v3735_v50 = vpack.c.bf16 %v356_v46, %v353_v45  ;;  %v362_v55 = vld [vmem:[#allocation11 + $0xa8] sm:$0xff] }
  0x71   :  { %2824 = vmatprep.subr.bf16.mxu1 %v3556_v3  ;;  %2799 = vmatprep.subr.bf16.mxu0 %v2798_v4  ;;  %v3716_v34 = vpack.c.bf16 %v351_v29, %v348_v28  ;;  %v347_v36 = vld [vmem:[#allocation11 + $0x30] sm:$0xff]  ;;  %v364_v53 = vld [vmem:[#allocation11 + $0xb8] sm:$0xff]  ;;  %v366_v56 = vld [vmem:[#allocation11 + $0xc8] sm:$0xff] }
  0x72   :  { %v3722_v41 = vpack.c.bf16 %v350_v37, %v347_v36  ;;  %v355_v42 = vld [vmem:[#allocation11 + $0x70] sm:$0xff]  ;;  %v369_v57 = vld [vmem:[#allocation11 + $0xe0] sm:$0xff]  ;;  %v3743_v58 = vpack.c.bf16 %v364_v53, %v361_v51  ;;  %v370_v62 = vld [vmem:[#allocation11 + $0xe8] sm:$0xff] }
  0x73   :  { %v132_v22 = vld [vmem:[#allocation2] sm:$0xff]  ;;  %v3733_v49 = vpack.c.bf16 %v358_v44, %v355_v42  ;;  %v3749_v61 = vpack.c.bf16 %v369_v57, %v366_v56  ;;  %v365_v63 = vld [vmem:[#allocation11 + $0xc0] sm:$0xff]  ;;  %v368_v0 = vld [vmem:[#allocation11 + $0xd8] sm:$0xff]  ;;  %v184_v44 = vlaneseq }
  0x74   :  { %2826 = vmatpush3.bf16.msra.mxu1 %v2825_v11  ;;  %2801 = vmatpush1.bf16.msra.mxu0 %v2800_v12  ;;  %v133_v30 = vmax.f32 %v132_v22, 0.0  ;;  %v363_v48 = vld [vmem:[#allocation11 + $0xb0] sm:$0xff]  ;;  %v372_v1 = vld [vmem:[#allocation11 + $0xf8] sm:$0xff]  ;;  %v3755_v5 = vpack.c.bf16 %v368_v0, %v365_v63  ;;  %v373_v6 = vld [vmem:[#allocation11 + $0x100] sm:$0xff] }
  0x75   :  { %2827 = vmatprep.subr.bf16.mxu1 %v3556_v3  ;;  %2803 = vmatprep.subr.bf16.mxu0 %v2802_v14  ;;  %v3739_v52 = vpack.c.bf16 %v363_v48, %v360_v47  ;;  %v359_v54 = vld [vmem:[#allocation11 + $0x90] sm:$0xff]  ;;  %v376_v9 = vld [vmem:[#allocation11 + $0x118] sm:$0xff]  ;;  %v374_v11 = vld [vmem:[#allocation11 + $0x108] sm:$0xff]  ;;  %v185_v45 = vshrl.u32 %v184_v44, 7 }
  0x76   :  { %v3745_v59 = vpack.c.bf16 %v362_v55, %v359_v54  ;;  %v367_v60 = vld [vmem:[#allocation11 + $0xd0] sm:$0xff]  ;;  %v378_v12 = vld [vmem:[#allocation11 + $0x128] sm:$0xff]  ;;  %v381_v13 = vld [vmem:[#allocation11 + $0x140] sm:$0xff]  ;;  %v3763_v14 = vpack.c.bf16 %v376_v9, %v373_v6 }
  0x77   :  { %v375_v2 = vld [vmem:[#allocation11 + $0x110] sm:$0xff]  ;;  %v3753_v4 = vpack.c.bf16 %v370_v62, %v367_v60  ;;  %v3769_v17 = vpack.c.bf16 %v381_v13, %v378_v12  ;;  %v382_v18 = vld [vmem:[#allocation11 + $0x148] sm:$0xff]  ;;  %v377_v19 = vld [vmem:[#allocation11 + $0x120] sm:$0xff]  ;;  %v186_v46 = vsub.s32 0, %v185_v45  ;;  %v194_v51 = vsub.s32 2, %v185_v45 }
  0x78   :  { %2829 = vmatpush3.bf16.msra.mxu1 %v2828_v20  ;;  %2805 = vmatpush1.bf16.msra.mxu0 %v2804_v21  ;;  %v3759_v7 = vpack.c.bf16 %v375_v2, %v372_v1  ;;  %v371_v10 = vld [vmem:[#allocation11 + $0xf0] sm:$0xff]  ;;  %v380_v20 = vld [vmem:[#allocation11 + $0x138] sm:$0xff]  ;;  %v385_v26 = vld [vmem:[#allocation11 + $0x160] sm:$0xff]  ;;  %v190_v0 = vsub.s32 1, %v185_v45 }
  0x79   :  { %2862 = vmatprep.subr.bf16.mxu1 %v3556_v3  ;;  %2831 = vmatprep.subr.bf16.mxu0 %v3708_v24  ;;  %v3765_v15 = vpack.c.bf16 %v374_v11, %v371_v10  ;;  %v379_v16 = vld [vmem:[#allocation11 + $0x130] sm:$0xff]  ;;  %v384_v21 = vld [vmem:[#allocation11 + $0x158] sm:$0xff]  ;;  %v3775_v25 = vpack.c.bf16 %v380_v20, %v377_v19 }
  0x7a   :  { %v387_v22 = vld [vmem:[#allocation11 + $0x170] sm:$0xff]  ;;  %v3773_v23 = vpack.c.bf16 %v382_v18, %v379_v16  ;;  %v388_v28 = vld [vmem:[#allocation11 + $0x178] sm:$0xff] }
  0x7b   :  { %264 = vmatmul.mubr.f32.vlgmr.msra.gmra.mrb[0].mxu0 %v133_v30  ;;  %2457 = vmatmul.mubr.f32.vlgmr.msra.gmra.mrb[0].mxu1 %v133_v30  ;;  %v3779_v27 = vpack.c.bf16 %v387_v22, %v384_v21  ;;  %v383_v29 = vld [vmem:[#allocation11 + $0x150] sm:$0xff]  ;;  %v386_v30 = vld [vmem:[#allocation11 + $0x168] sm:$0xff]  ;;  %v3783_v33 = vpack.c.bf16 %v388_v28, %v385_v26 }
  0x7c   :  { %2864 = vmatpush3.bf16.msra.mxu1 %v3710_v31  ;;  %2833 = vmatpush1.bf16.msra.mxu0 %v3712_v32  ;;  %v3785_v35 = vpack.c.bf16 %v386_v30, %v383_v29  ;;  %v340_v36 = vld [vmem:[%s4150_s2] sm:$0x1] }
  0x7d   :  { %2865 = vmatprep.subr.bf16.mxu1 %v3556_v3  ;;  %2835 = vmatprep.subr.bf16.mxu0 %v3716_v34  ;;  %v182_v47 = vld [vmem:[%s4153_s5] sm:$0x7] }
  0x7e   :  { %2491 = vmatprep.mubr.msk.f32.mxu1 %vm3558_vm0, %v3557_v8  ;;  %453 = vmatprep.mubr.f32.mxu0 %v3557_v8  ;;  %v187_v48 = vrot.slane %v182_v47, %v186_v46  ;;  %v195_v54 = vrot.slane %v182_v47, %v194_v51  ;;  %v191_v6 = vrot.slane %v182_v47, %v190_v0 }
  0x80   :  { %2867 = vmatpush3.bf16.msra.mxu1 %v3720_v40  ;;  %2837 = vmatpush1.bf16.msra.mxu0 %v3722_v41 }
  0x81   :  { %2868 = vmatprep.subr.bf16.mxu1 %v3556_v3  ;;  %2839 = vmatprep.subr.bf16.mxu0 %v3726_v43 }
  0x84   :  { %2870 = vmatpush3.bf16.msra.mxu1 %v3733_v49  ;;  %2841 = vmatpush1.bf16.msra.mxu0 %v3735_v50 }
  0x85   :  { %2871 = vmatprep.subr.bf16.mxu1 %v3556_v3  ;;  %2843 = vmatprep.subr.bf16.mxu0 %v3739_v52 }
  0x88   :  { %2873 = vmatpush3.bf16.msra.mxu1 %v3743_v58  ;;  %2845 = vmatpush1.bf16.msra.mxu0 %v3745_v59 }
  0x89   :  { %2874 = vmatprep.subr.bf16.mxu1 %v3556_v3  ;;  %2847 = vmatprep.subr.bf16.mxu0 %v3749_v61 }
  0x8c   :  { %2876 = vmatpush3.bf16.msra.mxu1 %v3753_v4  ;;  %2849 = vmatpush1.bf16.msra.mxu0 %v3755_v5 }
  0x8d   :  { %2877 = vmatprep.subr.bf16.mxu1 %v3556_v3  ;;  %2851 = vmatprep.subr.bf16.mxu0 %v3759_v7 }
  0x90   :  { %2879 = vmatpush3.bf16.msra.mxu1 %v3763_v14  ;;  %2853 = vmatpush1.bf16.msra.mxu0 %v3765_v15 }
  0x91   :  { %2880 = vmatprep.subr.bf16.mxu1 %v3556_v3  ;;  %2855 = vmatprep.subr.bf16.mxu0 %v3769_v17 }
  0x94   :  { %2882 = vmatpush3.bf16.msra.mxu1 %v3773_v23  ;;  %2857 = vmatpush1.bf16.msra.mxu0 %v3775_v25 }
  0x95   :  { %2883 = vmatprep.subr.bf16.mxu1 %v3556_v3  ;;  %2859 = vmatprep.subr.bf16.mxu0 %v3779_v27 }
  0x98   :  { %2885 = vmatpush3.bf16.msra.mxu1 %v3783_v33  ;;  %2861 = vmatpush1.bf16.msra.mxu0 %v3785_v35 }
  0x99   :  { %2887 = vmatprep.subr.bf16.mxu0 %v3708_v24  ;;  %2918 = vmatprep.subr.bf16.mxu1 %v3556_v3 }
  0x9b   :  { %2492 = vmatmul.mubr.f32.vlgmr.msra.gmra.mrb[2].mxu1 %v340_v36  ;;  %454 = vmatmul.mubr.f32.vlgmr.msra.gmra.mrb[2].mxu0 %v340_v36 }
  0x9c   :  { %2889 = vmatpush1.bf16.msra.mxu0 %v3712_v32  ;;  %2920 = vmatpush3.bf16.msra.mxu1 %v3710_v31 }
  0x9d   :  { %2891 = vmatprep.subr.bf16.mxu0 %v3716_v34  ;;  %2921 = vmatprep.subr.bf16.mxu1 %v3556_v3 }
  0x9e   :  { %662 = vmatprep.mubr.f32.mxu0 %v3557_v8  ;;  %2526 = vmatprep.mubr.msk.f32.mxu1 %vm3558_vm0, %v3557_v8 }
  0xa0   :  { %2893 = vmatpush1.bf16.msra.mxu0 %v3722_v41  ;;  %2923 = vmatpush3.bf16.msra.mxu1 %v3720_v40 }
  0xa1   :  { %2895 = vmatprep.subr.bf16.mxu0 %v3726_v43  ;;  %2924 = vmatprep.subr.bf16.mxu1 %v3556_v3 }
  0xa4   :  { %2897 = vmatpush1.bf16.msra.mxu0 %v3735_v50  ;;  %2926 = vmatpush3.bf16.msra.mxu1 %v3733_v49 }
  0xa5   :  { %2899 = vmatprep.subr.bf16.mxu0 %v3739_v52  ;;  %2927 = vmatprep.subr.bf16.mxu1 %v3556_v3 }
  0xa8   :  { %2901 = vmatpush1.bf16.msra.mxu0 %v3745_v59  ;;  %2929 = vmatpush3.bf16.msra.mxu1 %v3743_v58 }
  0xa9   :  { %2903 = vmatprep.subr.bf16.mxu0 %v3749_v61  ;;  %2930 = vmatprep.subr.bf16.mxu1 %v3556_v3 }
  0xac   :  { %2905 = vmatpush1.bf16.msra.mxu0 %v3755_v5  ;;  %2932 = vmatpush3.bf16.msra.mxu1 %v3753_v4 }
  0xad   :  { %2907 = vmatprep.subr.bf16.mxu0 %v3759_v7  ;;  %2933 = vmatprep.subr.bf16.mxu1 %v3556_v3 }
  0xb0   :  { %2909 = vmatpush1.bf16.msra.mxu0 %v3765_v15  ;;  %2935 = vmatpush3.bf16.msra.mxu1 %v3763_v14 }
  0xb1   :  { %2911 = vmatprep.subr.bf16.mxu0 %v3769_v17  ;;  %2936 = vmatprep.subr.bf16.mxu1 %v3556_v3 }
  0xb4   :  { %2913 = vmatpush1.bf16.msra.mxu0 %v3775_v25  ;;  %2938 = vmatpush3.bf16.msra.mxu1 %v3773_v23 }
  0xb5   :  { %2915 = vmatprep.subr.bf16.mxu0 %v3779_v27  ;;  %2939 = vmatprep.subr.bf16.mxu1 %v3556_v3 }
  0xb8   :  { %2917 = vmatpush1.bf16.msra.mxu0 %v3785_v35  ;;  %2941 = vmatpush3.bf16.msra.mxu1 %v3783_v33 }
  0xb9   :  { %2943 = vmatprep.subr.bf16.mxu0 %v3708_v24  ;;  %2974 = vmatprep.subr.bf16.mxu1 %v3556_v3 }
 0x14e   :  { %v265_v37 = vpop.f32.mrb[0].mxu0  ;;  %v336_v38 = vpop.f32.mrb[0].mxu1 }
 0x14f   :  { %v267_v39 = vpop.f32.mrb[1].mxu0  ;;  %v2458_v42 = vpop.f32.mrb[1].mxu1  ;;  %v3834_v53 = vadd.f32 %v265_v37, %v187_v48  ;;  %v3837_v1 = vadd.f32 %v336_v38, %v195_v54 }
 0x150   :  { %v3840_v10 = vadd.f32 %v267_v39, %v191_v6  ;;  %v1211_v6 = vld [vmem:[#allocation11 + $0x8] sm:$0xff] }
 0x16e   :  { %v526_v55 = vpop.f32.mrb[2].mxu1  ;;  %v455_v56 = vpop.f32.mrb[2].mxu0 }
 0x16f   :  { %v530_v57 = vadd.f32 %v455_v56, %v3834_v53  ;;  %v457_v60 = vpop.f32.mrb[3].mxu0  ;;  %v2493_v62 = vpop.f32.mrb[3].mxu1  ;;  %v532_v2 = vadd.f32 %v526_v55, %v3837_v1 }
 0x170   :  { %v531_v11 = vadd.f32 %v457_v60, %v3840_v10 }
 0x171   :  { %v2237_v63 = vmul.f32 -1.442695, %v530_v57  ;;  %v2238_v9 = vmul.f32 -1.442695, %v532_v2 }
 0x173   :  { %3315 = vpow2.f32 %v2237_v63 }
 0x174   :  { %3317 = vpow2.f32 %v2238_v9  ;;  %v1214_v9 = vld [vmem:[#allocation11 + $0x20] sm:$0xff] }
 0x175   :  { %3319 = vtanh.f32 %v531_v11  ;;  %v3921_v11 = vpack.c.bf16 %v1214_v9, %v1211_v6  ;;  %v1248_v6 = vld [vmem:[#allocation11 + $0x130] sm:$0xff]  ;;  %v1251_v9 = vld [vmem:[#allocation11 + $0x148] sm:$0xff] }
 0x17d   :  { %v3316_v12 = vpop.eup %3315 }
 0x17e   :  { %v536_v13 = vadd.f32 1.0, %v3316_v12  ;;  %v3318_v16 = vpop.eup %3317  ;;  %v1210_v12 = vld [vmem:[#allocation11] sm:$0xff] }
 0x17f   :  { %v543_v18 = vadd.f32 1.0, %v3318_v16  ;;  %v3320_v19 = vpop.eup %3319  ;;  %v1212_v16 = vld [vmem:[#allocation11 + $0x10] sm:$0xff] }
 0x180   :  { %3321 = vrcp.f32 %v536_v13  ;;  %v1213_v13 = vld [vmem:[#allocation11 + $0x18] sm:$0xff] }
 0x181   :  { %3323 = vrcp.f32 %v543_v18  ;;  %v3923_v18 = vpack.c.bf16 %v1213_v13, %v1210_v12  ;;  %v1253_v12 = vld [vmem:[#allocation11 + $0x158] sm:$0xff]  ;;  %v1256_v13 = vld [vmem:[#allocation11 + $0x170] sm:$0xff] }
 0x18a   :  { %v3322_v20 = vpop.eup %3321 }
 0x18b   :  { %v546_v21 = vmul.f32 %v3322_v20, %v3320_v19  ;;  %v3324_v22 = vpop.eup %3323  ;;  %v1215_v19 = vld [vmem:[#allocation11 + $0x28] sm:$0xff] }
 0x18c   :  { %v3926_v20 = vpack.c.bf16 %v1215_v19, %v1212_v16  ;;  %v3985_v19 = vpack.c.bf16 %v1251_v9, %v1248_v6 }
 0x18d   :  { %3325 = vtanh.f32 %v546_v21  ;;  %v1217_v21 = vld [vmem:[#allocation11 + $0x38] sm:$0xff] }
 0x197   :  { %v3326_v26 = vpop.eup %3325 }
 0x198   :  { %v548_v28 = vmul.f32 %v3326_v26, %v3324_v22  ;;  %v1220_v22 = vld [vmem:[#allocation11 + $0x50] sm:$0xff] }
 0x199   :  { %v3930_v26 = vpack.c.bf16 %v1220_v22, %v1217_v21  ;;  %v3987_v21 = vpack.c.bf16 %v1256_v13, %v1253_v12  ;;  %v1252_v22 = vld [vmem:[#allocation11 + $0x150] sm:$0xff] }
 0x19a   :  { %549 = vst [vmem:[#allocation3] sm:$0x1] %v548_v28  ;;  %663 = vmatmul.mubr.f32.vlgmr.msra.gmra.mrb[4].mxu0 %v548_v28  ;;  %2527 = vmatmul.mubr.f32.vlgmr.msra.gmra.mrb[4].mxu1 %v548_v28  ;;  %v1216_v28 = vld [vmem:[#allocation11 + $0x30] sm:$0xff] }
 0x19b   :  { %2945 = vmatpush1.bf16.msra.mxu0 %v3712_v32  ;;  %2976 = vmatpush3.bf16.msra.mxu1 %v3710_v31 }
 0x19c   :  { %2947 = vmatprep.subr.bf16.mxu0 %v3716_v34  ;;  %2977 = vmatprep.subr.bf16.mxu1 %v3556_v3 }
 0x19d   :  { %883 = vmatprep.mubr.f32.mxu0 %v3557_v8  ;;  %2561 = vmatprep.mubr.msk.f32.mxu1 %vm3558_vm0, %v3557_v8 }
 0x19f   :  { %2949 = vmatpush1.bf16.msra.mxu0 %v3722_v41  ;;  %2979 = vmatpush3.bf16.msra.mxu1 %v3720_v40 }
 0x1a0   :  { %2951 = vmatprep.subr.bf16.mxu0 %v3726_v43  ;;  %2980 = vmatprep.subr.bf16.mxu1 %v3556_v3 }
 0x1a3   :  { %2953 = vmatpush1.bf16.msra.mxu0 %v3735_v50  ;;  %2982 = vmatpush3.bf16.msra.mxu1 %v3733_v49 }
 0x1a4   :  { %2955 = vmatprep.subr.bf16.mxu0 %v3739_v52  ;;  %2983 = vmatprep.subr.bf16.mxu1 %v3556_v3 }
 0x1a7   :  { %2957 = vmatpush1.bf16.msra.mxu0 %v3745_v59  ;;  %2985 = vmatpush3.bf16.msra.mxu1 %v3743_v58 }
 0x1a8   :  { %2959 = vmatprep.subr.bf16.mxu0 %v3749_v61  ;;  %2986 = vmatprep.subr.bf16.mxu1 %v3556_v3 }
 0x1ab   :  { %2961 = vmatpush1.bf16.msra.mxu0 %v3755_v5  ;;  %2988 = vmatpush3.bf16.msra.mxu1 %v3753_v4 }
 0x1ac   :  { %2963 = vmatprep.subr.bf16.mxu0 %v3759_v7  ;;  %2989 = vmatprep.subr.bf16.mxu1 %v3556_v3 }
 0x1af   :  { %2965 = vmatpush1.bf16.msra.mxu0 %v3765_v15  ;;  %2991 = vmatpush3.bf16.msra.mxu1 %v3763_v14 }
 0x1b0   :  { %2967 = vmatprep.subr.bf16.mxu0 %v3769_v17  ;;  %2992 = vmatprep.subr.bf16.mxu1 %v3556_v3 }
 0x1b3   :  { %2969 = vmatpush1.bf16.msra.mxu0 %v3775_v25  ;;  %2994 = vmatpush3.bf16.msra.mxu1 %v3773_v23 }
 0x1b4   :  { %2971 = vmatprep.subr.bf16.mxu0 %v3779_v27  ;;  %2995 = vmatprep.subr.bf16.mxu1 %v3556_v3 }
 0x1b7   :  { %2973 = vmatpush1.bf16.msra.mxu0 %v3785_v35  ;;  %2997 = vmatpush3.bf16.msra.mxu1 %v3783_v33 }
 0x1b8   :  { %2999 = vmatprep.subr.bf16.mxu0 %v3708_v24  ;;  %3030 = vmatprep.subr.bf16.mxu1 %v3556_v3 }
 0x26d   :  { %v664_v29 = vpop.f32.mrb[4].mxu0  ;;  %v735_v30 = vpop.f32.mrb[4].mxu1 }
 0x26e   :  { %v742_v36 = vrot.slane %v664_v29, 7  ;;  %v666_v37 = vpop.f32.mrb[5].mxu0  ;;  %v2528_v38 = vpop.f32.mrb[5].mxu1  ;;  %v744_v42 = vrot.slane %v735_v30, 7  ;;  %v1219_v29 = vld [vmem:[#allocation11 + $0x48] sm:$0xff]  ;;  %v1218_v30 = vld [vmem:[#allocation11 + $0x40] sm:$0xff] }
 0x26f   :  { %v743_v47 = vrot.slane %v666_v37, 7  ;;  %v1221_v37 = vld [vmem:[#allocation11 + $0x58] sm:$0xff] }
 0x270   :  { %v748_v39 = vadd.f32 %v742_v36, %v3834_v53  ;;  %v750_v45 = vadd.f32 %v744_v42, %v3837_v1  ;;  %v3933_v36 = vpack.c.bf16 %v1219_v29, %v1216_v28  ;;  %v3936_v38 = vpack.c.bf16 %v1221_v37, %v1218_v30  ;;  %v1226_v42 = vld [vmem:[#allocation11 + $0x80] sm:$0xff]  ;;  %v1255_v28 = vld [vmem:[#allocation11 + $0x168] sm:$0xff]  ;;  %v1257_v30 = vld [vmem:[#allocation11 + $0x178] sm:$0xff] }
 0x271   :  { %v749_v48 = vadd.f32 %v743_v47, %v3840_v10  ;;  %v1224_v47 = vld [vmem:[#allocation11 + $0x70] sm:$0xff]  ;;  %v1254_v29 = vld [vmem:[#allocation11 + $0x160] sm:$0xff]  ;;  %v3991_v37 = vpack.c.bf16 %v1255_v28, %v1252_v22 }
 0x272   :  { %v2239_v44 = vmul.f32 -1.442695, %v748_v39  ;;  %v2240_v46 = vmul.f32 -1.442695, %v750_v45  ;;  %v1223_v39 = vld [vmem:[#allocation11 + $0x68] sm:$0xff]  ;;  %v1222_v45 = vld [vmem:[#allocation11 + $0x60] sm:$0xff] }
 0x274   :  { %3327 = vpow2.f32 %v2239_v44  ;;  %v3940_v44 = vpack.c.bf16 %v1226_v42, %v1223_v39  ;;  %v3995_v39 = vpack.c.bf16 %v1257_v30, %v1254_v29 }
 0x275   :  { %3329 = vpow2.f32 %v2240_v46  ;;  %v1225_v46 = vld [vmem:[#allocation11 + $0x78] sm:$0xff] }
 0x276   :  { %3331 = vtanh.f32 %v749_v48  ;;  %v3943_v48 = vpack.c.bf16 %v1225_v46, %v1222_v45 }
 0x27e   :  { %v3328_v24 = vpop.eup %3327 }
 0x27f   :  { %v754_v51 = vadd.f32 1.0, %v3328_v24  ;;  %v3330_v54 = vpop.eup %3329  ;;  %v1227_v24 = vld [vmem:[#allocation11 + $0x88] sm:$0xff] }
 0x280   :  { %v761_v55 = vadd.f32 1.0, %v3330_v54  ;;  %v3332_v56 = vpop.eup %3331  ;;  %v1229_v54 = vld [vmem:[#allocation11 + $0x98] sm:$0xff] }
 0x281   :  { %3333 = vrcp.f32 %v754_v51  ;;  %v3946_v51 = vpack.c.bf16 %v1227_v24, %v1224_v47 }
 0x282   :  { %3335 = vrcp.f32 %v761_v55  ;;  %v1232_v55 = vld [vmem:[#allocation11 + $0xb0] sm:$0xff] }
 0x28b   :  { %v3334_v57 = vpop.eup %3333 }
 0x28c   :  { %v764_v60 = vmul.f32 %v3334_v57, %v3332_v56  ;;  %v3336_v62 = vpop.eup %3335  ;;  %v3950_v56 = vpack.c.bf16 %v1232_v55, %v1229_v54  ;;  %v1228_v57 = vld [vmem:[#allocation11 + $0x90] sm:$0xff] }
 0x28e   :  { %3337 = vtanh.f32 %v764_v60  ;;  %v1231_v60 = vld [vmem:[#allocation11 + $0xa8] sm:$0xff] }
 0x298   :  { %v3338_v63 = vpop.eup %3337 }
 0x299   :  { %v766_v0 = vmul.f32 %v3338_v63, %v3336_v62  ;;  %v1230_v62 = vld [vmem:[#allocation11 + $0xa0] sm:$0xff]  ;;  %v3953_v63 = vpack.c.bf16 %v1231_v60, %v1228_v57 }
 0x29b   :  { %767 = vst [vmem:[#allocation3] sm:$0x2] %v766_v0  ;;  %v817_v2 = vrot.slane %v766_v0, 1  ;;  %v1233_v0 = vld [vmem:[#allocation11 + $0xb8] sm:$0xff] }
 0x29d   :  { %884 = vmatmul.mubr.f32.vlgmr.msra.gmra.mrb[6].mxu0 %v817_v2  ;;  %2562 = vmatmul.mubr.f32.vlgmr.msra.gmra.mrb[6].mxu1 %v817_v2  ;;  %v3956_v2 = vpack.c.bf16 %v1233_v0, %v1230_v62 }
 0x29e   :  { %3001 = vmatpush1.bf16.msra.mxu0 %v3712_v32  ;;  %3032 = vmatpush3.bf16.msra.mxu1 %v3710_v31 }
 0x29f   :  { %3003 = vmatprep.subr.bf16.mxu0 %v3716_v34  ;;  %3033 = vmatprep.subr.bf16.mxu1 %v3556_v3 }
 0x2a0   :  { %1104 = vmatprep.mubr.f32.mxu0 %v3557_v8  ;;  %2596 = vmatprep.mubr.msk.f32.mxu1 %vm3558_vm0, %v3557_v8 }
 0x2a2   :  { %3005 = vmatpush1.bf16.msra.mxu0 %v3722_v41  ;;  %3035 = vmatpush3.bf16.msra.mxu1 %v3720_v40 }
 0x2a3   :  { %3007 = vmatprep.subr.bf16.mxu0 %v3726_v43  ;;  %3036 = vmatprep.subr.bf16.mxu1 %v3556_v3 }
 0x2a6   :  { %3009 = vmatpush1.bf16.msra.mxu0 %v3735_v50  ;;  %3038 = vmatpush3.bf16.msra.mxu1 %v3733_v49 }
 0x2a7   :  { %3011 = vmatprep.subr.bf16.mxu0 %v3739_v52  ;;  %3039 = vmatprep.subr.bf16.mxu1 %v3556_v3 }
 0x2aa   :  { %3013 = vmatpush1.bf16.msra.mxu0 %v3745_v59  ;;  %3041 = vmatpush3.bf16.msra.mxu1 %v3743_v58 }
 0x2ab   :  { %3015 = vmatprep.subr.bf16.mxu0 %v3749_v61  ;;  %3042 = vmatprep.subr.bf16.mxu1 %v3556_v3 }
 0x2ae   :  { %3017 = vmatpush1.bf16.msra.mxu0 %v3755_v5  ;;  %3044 = vmatpush3.bf16.msra.mxu1 %v3753_v4 }
 0x2af   :  { %3019 = vmatprep.subr.bf16.mxu0 %v3759_v7  ;;  %3045 = vmatprep.subr.bf16.mxu1 %v3556_v3 }
 0x2b2   :  { %3021 = vmatpush1.bf16.msra.mxu0 %v3765_v15  ;;  %3047 = vmatpush3.bf16.msra.mxu1 %v3763_v14 }
 0x2b3   :  { %3023 = vmatprep.subr.bf16.mxu0 %v3769_v17  ;;  %3048 = vmatprep.subr.bf16.mxu1 %v3556_v3 }
 0x2b6   :  { %3025 = vmatpush1.bf16.msra.mxu0 %v3775_v25  ;;  %3050 = vmatpush3.bf16.msra.mxu1 %v3773_v23 }
 0x2b7   :  { %3027 = vmatprep.subr.bf16.mxu0 %v3779_v27  ;;  %3051 = vmatprep.subr.bf16.mxu1 %v3556_v3 }
 0x2ba   :  { %3029 = vmatpush1.bf16.msra.mxu0 %v3785_v35  ;;  %3053 = vmatpush3.bf16.msra.mxu1 %v3783_v33 }
 0x2bb   :  { %3086 = vmatprep.subr.bf16.mxu1 %v3556_v3  ;;  %3055 = vmatprep.subr.bf16.mxu0 %v3921_v11 }
 0x370   :  { %v885_v31 = vpop.f32.mrb[6].mxu0  ;;  %v956_v32 = vpop.f32.mrb[6].mxu1 }
 0x371   :  { %v963_v34 = vrot.slane %v885_v31, 6  ;;  %v887_v40 = vpop.f32.mrb[7].mxu0  ;;  %v2563_v41 = vpop.f32.mrb[7].mxu1  ;;  %v965_v49 = vrot.slane %v956_v32, 6  ;;  %v1235_v31 = vld [vmem:[#allocation11 + $0xc8] sm:$0xff]  ;;  %v1238_v32 = vld [vmem:[#allocation11 + $0xe0] sm:$0xff] }
 0x372   :  { %v964_v59 = vrot.slane %v887_v40, 6  ;;  %v1234_v40 = vld [vmem:[#allocation11 + $0xc0] sm:$0xff]  ;;  %v1237_v41 = vld [vmem:[#allocation11 + $0xd8] sm:$0xff] }
 0x373   :  { %v969_v43 = vadd.f32 %v963_v34, %v3834_v53  ;;  %v971_v52 = vadd.f32 %v965_v49, %v3837_v1  ;;  %v3960_v34 = vpack.c.bf16 %v1238_v32, %v1235_v31  ;;  %v3963_v49 = vpack.c.bf16 %v1237_v41, %v1234_v40 }
 0x374   :  { %v970_v61 = vadd.f32 %v964_v59, %v3840_v10  ;;  %v1244_v59 = vld [vmem:[#allocation11 + $0x110] sm:$0xff] }
 0x375   :  { %v2241_v50 = vmul.f32 -1.442695, %v969_v43  ;;  %v2242_v58 = vmul.f32 -1.442695, %v971_v52  ;;  %v1236_v43 = vld [vmem:[#allocation11 + $0xd0] sm:$0xff] }
 0x377   :  { %3339 = vpow2.f32 %v2241_v50  ;;  %v1239_v50 = vld [vmem:[#allocation11 + $0xe8] sm:$0xff] }
 0x378   :  { %3341 = vpow2.f32 %v2242_v58  ;;  %v3966_v52 = vpack.c.bf16 %v1239_v50, %v1236_v43  ;;  %v1241_v58 = vld [vmem:[#allocation11 + $0xf8] sm:$0xff] }
 0x379   :  { %3343 = vtanh.f32 %v970_v61  ;;  %v1240_v61 = vld [vmem:[#allocation11 + $0xf0] sm:$0xff] }
 0x381   :  { %v3340_v4 = vpop.eup %3339 }
 0x382   :  { %v975_v5 = vadd.f32 1.0, %v3340_v4  ;;  %v3342_v7 = vpop.eup %3341  ;;  %v3969_v4 = vpack.c.bf16 %v1244_v59, %v1241_v58 }
 0x383   :  { %v982_v14 = vadd.f32 1.0, %v3342_v7  ;;  %v3344_v15 = vpop.eup %3343  ;;  %v1242_v7 = vld [vmem:[#allocation11 + $0x100] sm:$0xff] }
 0x384   :  { %3345 = vrcp.f32 %v975_v5  ;;  %v1243_v5 = vld [vmem:[#allocation11 + $0x108] sm:$0xff] }
 0x385   :  { %3347 = vrcp.f32 %v982_v14  ;;  %v1245_v14 = vld [vmem:[#allocation11 + $0x118] sm:$0xff] }
 0x38e   :  { %v3346_v17 = vpop.eup %3345 }
 0x38f   :  { %v985_v23 = vmul.f32 %v3346_v17, %v3344_v15  ;;  %v3348_v25 = vpop.eup %3347  ;;  %v3972_v15 = vpack.c.bf16 %v1243_v5, %v1240_v61  ;;  %v3974_v17 = vpack.c.bf16 %v1245_v14, %v1242_v7 }
 0x391   :  { %3349 = vtanh.f32 %v985_v23  ;;  %v1247_v23 = vld [vmem:[#allocation11 + $0x128] sm:$0xff] }
 0x39b   :  { %v3350_v27 = vpop.eup %3349 }
 0x39c   :  { %v987_v33 = vmul.f32 %v3350_v27, %v3348_v25  ;;  %v1250_v25 = vld [vmem:[#allocation11 + $0x140] sm:$0xff] }
 0x39d   :  { %v1246_v27 = vld [vmem:[#allocation11 + $0x120] sm:$0xff] }
 0x39e   :  { %988 = vst [vmem:[#allocation3] sm:$0x4] %v987_v33  ;;  %v1038_v35 = vrot.slane %v987_v33, 2  ;;  %v3978_v33 = vpack.c.bf16 %v1250_v25, %v1247_v23 }
 0x3a0   :  { %1105 = vmatmul.mubr.f32.vlgmr.msra.gmra.mrb[8].mxu0 %v1038_v35  ;;  %2597 = vmatmul.mubr.f32.vlgmr.msra.gmra.mrb[8].mxu1 %v1038_v35  ;;  %v1249_v35 = vld [vmem:[#allocation11 + $0x138] sm:$0xff] }
 0x3a1   :  { %1325 = vmatprep.mubr.f32.mxu0 %v3557_v8  ;;  %2631 = vmatprep.mubr.msk.f32.mxu1 %vm3558_vm0, %v3557_v8  ;;  %v3981_v16 = vpack.c.bf16 %v1249_v35, %v1246_v27 }
 0x3a2   :  { %3057 = vmatpush1.bf16.msra.mxu0 %v3923_v18  ;;  %3088 = vmatpush3.bf16.msra.mxu1 %v3926_v20 }
 0x3a3   :  { %3089 = vmatprep.subr.bf16.mxu1 %v3556_v3  ;;  %3059 = vmatprep.subr.bf16.mxu0 %v3930_v26 }
 0x3a6   :  { %3061 = vmatpush1.bf16.msra.mxu0 %v3933_v36  ;;  %3091 = vmatpush3.bf16.msra.mxu1 %v3936_v38 }
 0x3a7   :  { %3092 = vmatprep.subr.bf16.mxu1 %v3556_v3  ;;  %3063 = vmatprep.subr.bf16.mxu0 %v3940_v44 }
 0x3aa   :  { %3065 = vmatpush1.bf16.msra.mxu0 %v3943_v48  ;;  %3094 = vmatpush3.bf16.msra.mxu1 %v3946_v51 }
 0x3ab   :  { %3095 = vmatprep.subr.bf16.mxu1 %v3556_v3  ;;  %3067 = vmatprep.subr.bf16.mxu0 %v3950_v56 }
 0x3ae   :  { %3069 = vmatpush1.bf16.msra.mxu0 %v3953_v63  ;;  %3097 = vmatpush3.bf16.msra.mxu1 %v3956_v2 }
 0x3af   :  { %3098 = vmatprep.subr.bf16.mxu1 %v3556_v3  ;;  %3071 = vmatprep.subr.bf16.mxu0 %v3960_v34 }
 0x3b2   :  { %3073 = vmatpush1.bf16.msra.mxu0 %v3963_v49  ;;  %3100 = vmatpush3.bf16.msra.mxu1 %v3966_v52 }
 0x3b3   :  { %3075 = vmatprep.subr.bf16.mxu0 %v3969_v4  ;;  %3101 = vmatprep.subr.bf16.mxu1 %v3556_v3 }
 0x3b6   :  { %3077 = vmatpush1.bf16.msra.mxu0 %v3972_v15  ;;  %3103 = vmatpush3.bf16.msra.mxu1 %v3974_v17 }
 0x3b7   :  { %3079 = vmatprep.subr.bf16.mxu0 %v3978_v33  ;;  %3104 = vmatprep.subr.bf16.mxu1 %v3556_v3 }
 0x3ba   :  { %3081 = vmatpush1.bf16.msra.mxu0 %v3981_v16  ;;  %3106 = vmatpush3.bf16.msra.mxu1 %v3985_v19 }
 0x3bb   :  { %3083 = vmatprep.subr.bf16.mxu0 %v3987_v21  ;;  %3107 = vmatprep.subr.bf16.mxu1 %v3556_v3 }
 0x3be   :  { %3085 = vmatpush1.bf16.msra.mxu0 %v3991_v37  ;;  %3109 = vmatpush3.bf16.msra.mxu1 %v3995_v39 }
 0x3bf   :  { %3111 = vmatprep.subr.bf16.mxu0 %v3921_v11  ;;  %3142 = vmatprep.subr.bf16.mxu1 %v3556_v3 }
 0x473   :  { %v1106_v42 = vpop.f32.mrb[8].mxu0  ;;  %v1177_v45 = vpop.f32.mrb[8].mxu1 }
 0x474   :  { %v1184_v46 = vrot.slane %v1106_v42, 5  ;;  %v1108_v47 = vpop.f32.mrb[9].mxu0  ;;  %v2598_v24 = vpop.f32.mrb[9].mxu1  ;;  %v1186_v55 = vrot.slane %v1177_v45, 5 }
 0x475   :  { %v1185_v0 = vrot.slane %v1108_v47, 5 }
 0x476   :  { %v1190_v54 = vadd.f32 %v1184_v46, %v3834_v53  ;;  %v1192_v60 = vadd.f32 %v1186_v55, %v3837_v1 }
 0x477   :  { %v1191_v31 = vadd.f32 %v1185_v0, %v3840_v10 }
 0x478   :  { %v2243_v57 = vmul.f32 -1.442695, %v1190_v54  ;;  %v2244_v62 = vmul.f32 -1.442695, %v1192_v60 }
 0x47a   :  { %3351 = vpow2.f32 %v2243_v57 }
 0x47b   :  { %3353 = vpow2.f32 %v2244_v62 }
 0x47c   :  { %3355 = vtanh.f32 %v1191_v31 }
 0x484   :  { %v3352_v32 = vpop.eup %3351 }
 0x485   :  { %v1196_v40 = vadd.f32 1.0, %v3352_v32  ;;  %v3354_v41 = vpop.eup %3353 }
 0x486   :  { %v1203_v43 = vadd.f32 1.0, %v3354_v41  ;;  %v3356_v50 = vpop.eup %3355 }
 0x487   :  { %3357 = vrcp.f32 %v1196_v40 }
 0x488   :  { %3359 = vrcp.f32 %v1203_v43 }
 0x491   :  { %v3358_v58 = vpop.eup %3357 }
 0x492   :  { %v1206_v59 = vmul.f32 %v3358_v58, %v3356_v50  ;;  %v3360_v61 = vpop.eup %3359 }
 0x494   :  { %3361 = vtanh.f32 %v1206_v59 }
 0x49e   :  { %v3362_v5 = vpop.eup %3361 }
 0x49f   :  { %v1208_v7 = vmul.f32 %v3362_v5, %v3360_v61 }
 0x4a1   :  { %1209 = vst [vmem:[#allocation3] sm:$0x8] %v1208_v7  ;;  %v1259_v14 = vrot.slane %v1208_v7, 3 }
 0x4a3   :  { %1326 = vmatmul.mubr.f32.vlgmr.msra.gmra.mrb[10].mxu0 %v1259_v14  ;;  %2632 = vmatmul.mubr.f32.vlgmr.msra.gmra.mrb[10].mxu1 %v1259_v14 }
 0x4a4   :  { %3113 = vmatpush1.bf16.msra.mxu0 %v3923_v18  ;;  %3144 = vmatpush3.bf16.msra.mxu1 %v3926_v20 }
 0x4a5   :  { %3115 = vmatprep.subr.bf16.mxu0 %v3930_v26  ;;  %3145 = vmatprep.subr.bf16.mxu1 %v3556_v3 }
 0x4a6   :  { %1546 = vmatprep.mubr.f32.mxu0 %v3557_v8  ;;  %2666 = vmatprep.mubr.msk.f32.mxu1 %vm3558_vm0, %v3557_v8 }
 0x4a8   :  { %3117 = vmatpush1.bf16.msra.mxu0 %v3933_v36  ;;  %3147 = vmatpush3.bf16.msra.mxu1 %v3936_v38 }
 0x4a9   :  { %3119 = vmatprep.subr.bf16.mxu0 %v3940_v44  ;;  %3148 = vmatprep.subr.bf16.mxu1 %v3556_v3 }
 0x4ac   :  { %3121 = vmatpush1.bf16.msra.mxu0 %v3943_v48  ;;  %3150 = vmatpush3.bf16.msra.mxu1 %v3946_v51 }
 0x4ad   :  { %3123 = vmatprep.subr.bf16.mxu0 %v3950_v56  ;;  %3151 = vmatprep.subr.bf16.mxu1 %v3556_v3 }
 0x4b0   :  { %3125 = vmatpush1.bf16.msra.mxu0 %v3953_v63  ;;  %3153 = vmatpush3.bf16.msra.mxu1 %v3956_v2 }
 0x4b1   :  { %3127 = vmatprep.subr.bf16.mxu0 %v3960_v34  ;;  %3154 = vmatprep.subr.bf16.mxu1 %v3556_v3 }
 0x4b4   :  { %3129 = vmatpush1.bf16.msra.mxu0 %v3963_v49  ;;  %3156 = vmatpush3.bf16.msra.mxu1 %v3966_v52 }
 0x4b5   :  { %3131 = vmatprep.subr.bf16.mxu0 %v3969_v4  ;;  %3157 = vmatprep.subr.bf16.mxu1 %v3556_v3 }
 0x4b8   :  { %3133 = vmatpush1.bf16.msra.mxu0 %v3972_v15  ;;  %3159 = vmatpush3.bf16.msra.mxu1 %v3974_v17 }
 0x4b9   :  { %3135 = vmatprep.subr.bf16.mxu0 %v3978_v33  ;;  %3160 = vmatprep.subr.bf16.mxu1 %v3556_v3 }
 0x4bc   :  { %3137 = vmatpush1.bf16.msra.mxu0 %v3981_v16  ;;  %3162 = vmatpush3.bf16.msra.mxu1 %v3985_v19 }
 0x4bd   :  { %3139 = vmatprep.subr.bf16.mxu0 %v3987_v21  ;;  %3163 = vmatprep.subr.bf16.mxu1 %v3556_v3 }
 0x4c0   :  { %3141 = vmatpush1.bf16.msra.mxu0 %v3991_v37  ;;  %3165 = vmatpush3.bf16.msra.mxu1 %v3995_v39 }
 0x4c1   :  { %3167 = vmatprep.subr.bf16.mxu0 %v3921_v11  ;;  %3198 = vmatprep.subr.bf16.mxu1 %v3556_v3 }
 0x576   :  { %v1327_v23 = vpop.f32.mrb[10].mxu0  ;;  %v1398_v25 = vpop.f32.mrb[10].mxu1 }
 0x577   :  { %v1405_v27 = vrot.slane %v1327_v23, 4  ;;  %v1329_v35 = vpop.f32.mrb[11].mxu0  ;;  %v2633_v6 = vpop.f32.mrb[11].mxu1  ;;  %v1407_v12 = vrot.slane %v1398_v25, 4 }
 0x578   :  { %v1406_v29 = vrot.slane %v1329_v35, 4 }
 0x579   :  { %v1411_v9 = vadd.f32 %v1405_v27, %v3834_v53  ;;  %v1413_v22 = vadd.f32 %v1407_v12, %v3837_v1 }
 0x57a   :  { %v1412_v30 = vadd.f32 %v1406_v29, %v3840_v10  ;;  %v2095_v29 = vld [vmem:[#allocation12] sm:$0xff] }
 0x57b   :  { %v2245_v13 = vmul.f32 -1.442695, %v1411_v9  ;;  %v2246_v28 = vmul.f32 -1.442695, %v1413_v22 }
 0x57d   :  { %3363 = vpow2.f32 %v2245_v13 }
 0x57e   :  { %3365 = vpow2.f32 %v2246_v28 }
 0x57f   :  { %3367 = vtanh.f32 %v1412_v30  ;;  %v2096_v30 = vld [vmem:[#allocation12 + $0x8] sm:$0xff] }
 0x587   :  { %v3364_v42 = vpop.eup %3363 }
 0x588   :  { %v1417_v45 = vadd.f32 1.0, %v3364_v42  ;;  %v3366_v46 = vpop.eup %3365  ;;  %v3279_v42 = vpack.c.bf16 %v2096_v30, %v2095_v29 }
 0x589   :  { %v1424_v47 = vadd.f32 1.0, %v3366_v46  ;;  %v3368_v24 = vpop.eup %3367  ;;  %v2098_v46 = vld [vmem:[#allocation12 + $0x18] sm:$0xff] }
 0x58a   :  { %3369 = vrcp.f32 %v1417_v45  ;;  %v2097_v45 = vld [vmem:[#allocation12 + $0x10] sm:$0xff] }
 0x58b   :  { %3371 = vrcp.f32 %v1424_v47  ;;  %v3282_v47 = vpack.c.bf16 %v2098_v46, %v2097_v45 }
 0x594   :  { %v3370_v54 = vpop.eup %3369 }
 0x595   :  { %v1427_v55 = vmul.f32 %v3370_v54, %v3368_v24  ;;  %v3372_v57 = vpop.eup %3371  ;;  %v2099_v24 = vld [vmem:[#allocation12 + $0x20] sm:$0xff]  ;;  %v2100_v54 = vld [vmem:[#allocation12 + $0x28] sm:$0xff] }
 0x597   :  { %3373 = vtanh.f32 %v1427_v55  ;;  %v3285_v55 = vpack.c.bf16 %v2100_v54, %v2099_v24 }
 0x5a1   :  { %v3374_v60 = vpop.eup %3373 }
 0x5a2   :  { %v1429_v62 = vmul.f32 %v3374_v60, %v3372_v57  ;;  %v2101_v57 = vld [vmem:[#allocation12 + $0x30] sm:$0xff] }
 0x5a4   :  { %1430 = vst [vmem:[#allocation3] sm:$0x10] %v1429_v62  ;;  %v1480_v0 = vrot.slane %v1429_v62, 4  ;;  %v2103_v62 = vld [vmem:[#allocation12 + $0x40] sm:$0xff] }
 0x5a6   :  { %1547 = vmatmul.mubr.f32.vlgmr.msra.gmra.mrb[12].mxu0 %v1480_v0  ;;  %2667 = vmatmul.mubr.f32.vlgmr.msra.gmra.mrb[12].mxu1 %v1480_v0  ;;  %v2104_v0 = vld [vmem:[#allocation12 + $0x48] sm:$0xff] }
 0x5a7   :  { %3169 = vmatpush1.bf16.msra.mxu0 %v3923_v18  ;;  %3200 = vmatpush3.bf16.msra.mxu1 %v3926_v20 }
 0x5a8   :  { %3171 = vmatprep.subr.bf16.mxu0 %v3930_v26  ;;  %3201 = vmatprep.subr.bf16.mxu1 %v3556_v3 }
 0x5a9   :  { %1767 = vmatprep.mubr.f32.mxu0 %v3557_v8  ;;  %2701 = vmatprep.mubr.msk.f32.mxu1 %vm3558_vm0, %v3557_v8 }
 0x5ab   :  { %3173 = vmatpush1.bf16.msra.mxu0 %v3933_v36  ;;  %3203 = vmatpush3.bf16.msra.mxu1 %v3936_v38 }
 0x5ac   :  { %3175 = vmatprep.subr.bf16.mxu0 %v3940_v44  ;;  %3204 = vmatprep.subr.bf16.mxu1 %v3556_v3 }
 0x5af   :  { %3177 = vmatpush1.bf16.msra.mxu0 %v3943_v48  ;;  %3206 = vmatpush3.bf16.msra.mxu1 %v3946_v51 }
 0x5b0   :  { %3179 = vmatprep.subr.bf16.mxu0 %v3950_v56  ;;  %3207 = vmatprep.subr.bf16.mxu1 %v3556_v3 }
 0x5b3   :  { %3181 = vmatpush1.bf16.msra.mxu0 %v3953_v63  ;;  %3209 = vmatpush3.bf16.msra.mxu1 %v3956_v2 }
 0x5b4   :  { %3183 = vmatprep.subr.bf16.mxu0 %v3960_v34  ;;  %3210 = vmatprep.subr.bf16.mxu1 %v3556_v3 }
 0x5b7   :  { %3185 = vmatpush1.bf16.msra.mxu0 %v3963_v49  ;;  %3212 = vmatpush3.bf16.msra.mxu1 %v3966_v52 }
 0x5b8   :  { %3187 = vmatprep.subr.bf16.mxu0 %v3969_v4  ;;  %3213 = vmatprep.subr.bf16.mxu1 %v3556_v3 }
 0x5bb   :  { %3189 = vmatpush1.bf16.msra.mxu0 %v3972_v15  ;;  %3215 = vmatpush3.bf16.msra.mxu1 %v3974_v17 }
 0x5bc   :  { %3191 = vmatprep.subr.bf16.mxu0 %v3978_v33  ;;  %3216 = vmatprep.subr.bf16.mxu1 %v3556_v3 }
 0x5bf   :  { %3193 = vmatpush1.bf16.msra.mxu0 %v3981_v16  ;;  %3218 = vmatpush3.bf16.msra.mxu1 %v3985_v19 }
 0x5c0   :  { %3195 = vmatprep.subr.bf16.mxu0 %v3987_v21  ;;  %3219 = vmatprep.subr.bf16.mxu1 %v3556_v3 }
 0x5c3   :  { %3197 = vmatpush1.bf16.msra.mxu0 %v3991_v37  ;;  %3221 = vmatpush3.bf16.msra.mxu1 %v3995_v39 }
 0x5c4   :  { %3223 = vmatprep.subr.bf16.mxu0 %v3921_v11  ;;  %3254 = vmatprep.subr.bf16.mxu1 %v3556_v3 }
 0x679   :  { %v1548_v31 = vpop.f32.mrb[12].mxu0  ;;  %v1619_v32 = vpop.f32.mrb[12].mxu1 }
 0x67a   :  { %v1626_v40 = vrot.slane %v1548_v31, 3  ;;  %v1550_v41 = vpop.f32.mrb[13].mxu0  ;;  %v2668_v43 = vpop.f32.mrb[13].mxu1  ;;  %v1628_v58 = vrot.slane %v1619_v32, 3  ;;  %v3291_v31 = vpack.c.bf16 %v2104_v0, %v2103_v62  ;;  %v2105_v32 = vld [vmem:[#allocation12 + $0x50] sm:$0xff] }
 0x67b   :  { %v1627_v7 = vrot.slane %v1550_v41, 3  ;;  %v2107_v43 = vld [vmem:[#allocation12 + $0x60] sm:$0xff] }
 0x67c   :  { %v1632_v50 = vadd.f32 %v1626_v40, %v3834_v53  ;;  %v1634_v61 = vadd.f32 %v1628_v58, %v3837_v1  ;;  %v2106_v40 = vld [vmem:[#allocation12 + $0x58] sm:$0xff] }
 0x67d   :  { %v1633_v14 = vadd.f32 %v1627_v7, %v3840_v10  ;;  %v3294_v41 = vpack.c.bf16 %v2106_v40, %v2105_v32 }
 0x67e   :  { %v2247_v59 = vmul.f32 -1.442695, %v1632_v50  ;;  %v2248_v5 = vmul.f32 -1.442695, %v1634_v61  ;;  %v2108_v50 = vld [vmem:[#allocation12 + $0x68] sm:$0xff]  ;;  %v2110_v61 = vld [vmem:[#allocation12 + $0x78] sm:$0xff] }
 0x67f   :  { %v3297_v58 = vpack.c.bf16 %v2108_v50, %v2107_v43 }
 0x680   :  { %3375 = vpow2.f32 %v2247_v59  ;;  %v2109_v59 = vld [vmem:[#allocation12 + $0x70] sm:$0xff] }
 0x681   :  { %3377 = vpow2.f32 %v2248_v5  ;;  %v3300_v5 = vpack.c.bf16 %v2110_v61, %v2109_v59 }
 0x682   :  { %3379 = vtanh.f32 %v1633_v14 }
 0x68a   :  { %v3376_v11 = vpop.eup %3375 }
 0x68b   :  { %v1638_v23 = vadd.f32 1.0, %v3376_v11  ;;  %v3378_v25 = vpop.eup %3377 }
 0x68c   :  { %v1645_v27 = vadd.f32 1.0, %v3378_v25  ;;  %v3380_v35 = vpop.eup %3379 }
 0x68d   :  { %3381 = vrcp.f32 %v1638_v23 }
 0x68e   :  { %3383 = vrcp.f32 %v1645_v27 }
 0x697   :  { %v3382_v6 = vpop.eup %3381 }
 0x698   :  { %v1648_v9 = vmul.f32 %v3382_v6, %v3380_v35  ;;  %v3384_v12 = vpop.eup %3383 }
 0x69a   :  { %3385 = vtanh.f32 %v1648_v9 }
 0x6a4   :  { %v3386_v13 = vpop.eup %3385 }
 0x6a5   :  { %v1650_v22 = vmul.f32 %v3386_v13, %v3384_v12 }
 0x6a7   :  { %1651 = vst [vmem:[#allocation3] sm:$0x20] %v1650_v22  ;;  %v1701_v28 = vrot.slane %v1650_v22, 5 }
 0x6a9   :  { %1768 = vmatmul.mubr.f32.vlgmr.msra.gmra.mrb[14].mxu0 %v1701_v28  ;;  %2702 = vmatmul.mubr.f32.vlgmr.msra.gmra.mrb[14].mxu1 %v1701_v28 }
 0x6aa   :  { %3225 = vmatpush1.bf16.msra.mxu0 %v3923_v18  ;;  %3256 = vmatpush3.bf16.msra.mxu1 %v3926_v20 }
 0x6ab   :  { %3227 = vmatprep.subr.bf16.mxu0 %v3930_v26  ;;  %3257 = vmatprep.subr.bf16.mxu1 %v3556_v3 }
 0x6ac   :  { %1988 = vmatprep.mubr.f32.mxu0 %v3557_v8  ;;  %2736 = vmatprep.mubr.msk.f32.mxu1 %vm3558_vm0, %v3557_v8 }
 0x6ae   :  { %3229 = vmatpush1.bf16.msra.mxu0 %v3933_v36  ;;  %3259 = vmatpush3.bf16.msra.mxu1 %v3936_v38 }
 0x6af   :  { %3231 = vmatprep.subr.bf16.mxu0 %v3940_v44  ;;  %3260 = vmatprep.subr.bf16.mxu1 %v3556_v3 }
 0x6b2   :  { %3233 = vmatpush1.bf16.msra.mxu0 %v3943_v48  ;;  %3262 = vmatpush3.bf16.msra.mxu1 %v3946_v51 }
 0x6b3   :  { %3235 = vmatprep.subr.bf16.mxu0 %v3950_v56  ;;  %3263 = vmatprep.subr.bf16.mxu1 %v3556_v3 }
 0x6b6   :  { %3237 = vmatpush1.bf16.msra.mxu0 %v3953_v63  ;;  %3265 = vmatpush3.bf16.msra.mxu1 %v3956_v2 }
 0x6b7   :  { %3239 = vmatprep.subr.bf16.mxu0 %v3960_v34  ;;  %3266 = vmatprep.subr.bf16.mxu1 %v3556_v3 }
 0x6ba   :  { %3241 = vmatpush1.bf16.msra.mxu0 %v3963_v49  ;;  %3268 = vmatpush3.bf16.msra.mxu1 %v3966_v52 }
 0x6bb   :  { %3243 = vmatprep.subr.bf16.mxu0 %v3969_v4  ;;  %3269 = vmatprep.subr.bf16.mxu1 %v3556_v3 }
 0x6be   :  { %3245 = vmatpush1.bf16.msra.mxu0 %v3972_v15  ;;  %3271 = vmatpush3.bf16.msra.mxu1 %v3974_v17 }
 0x6bf   :  { %3247 = vmatprep.subr.bf16.mxu0 %v3978_v33  ;;  %3272 = vmatprep.subr.bf16.mxu1 %v3556_v3 }
 0x6c2   :  { %3249 = vmatpush1.bf16.msra.mxu0 %v3981_v16  ;;  %3274 = vmatpush3.bf16.msra.mxu1 %v3985_v19 }
 0x6c3   :  { %3251 = vmatprep.subr.bf16.mxu0 %v3987_v21  ;;  %3275 = vmatprep.subr.bf16.mxu1 %v3556_v3 }
 0x6c6   :  { %3253 = vmatpush1.bf16.msra.mxu0 %v3991_v37  ;;  %3277 = vmatpush3.bf16.msra.mxu1 %v3995_v39 }
 0x6c7   :  { %3278 = vmatprep.subr.bf16.mxu0 %v3556_v3 }
 0x77c   :  { %v1769_v18 = vpop.f32.mrb[14].mxu0  ;;  %v1840_v20 = vpop.f32.mrb[14].mxu1 }
 0x77d   :  { %v1847_v26 = vrot.slane %v1769_v18, 2  ;;  %v1771_v36 = vpop.f32.mrb[15].mxu0  ;;  %v2703_v38 = vpop.f32.mrb[15].mxu1  ;;  %v1849_v48 = vrot.slane %v1840_v20, 2 }
 0x77e   :  { %v1848_v2 = vrot.slane %v1771_v36, 2 }
 0x77f   :  { %v1853_v44 = vadd.f32 %v1847_v26, %v3834_v53  ;;  %v1855_v56 = vadd.f32 %v1849_v48, %v3837_v1 }
 0x780   :  { %v1854_v34 = vadd.f32 %v1848_v2, %v3840_v10 }
 0x781   :  { %v2249_v51 = vmul.f32 -1.442695, %v1853_v44  ;;  %v2250_v63 = vmul.f32 -1.442695, %v1855_v56 }
 0x783   :  { %3387 = vpow2.f32 %v2249_v51 }
 0x784   :  { %3389 = vpow2.f32 %v2250_v63 }
 0x785   :  { %3391 = vtanh.f32 %v1854_v34 }
 0x78d   :  { %v3388_v49 = vpop.eup %3387 }
 0x78e   :  { %v1859_v52 = vadd.f32 1.0, %v3388_v49  ;;  %v3390_v4 = vpop.eup %3389 }
 0x78f   :  { %v1866_v15 = vadd.f32 1.0, %v3390_v4  ;;  %v3392_v17 = vpop.eup %3391 }
 0x790   :  { %3393 = vrcp.f32 %v1859_v52 }
 0x791   :  { %3395 = vrcp.f32 %v1866_v15 }
 0x79a   :  { %v3394_v33 = vpop.eup %3393 }
 0x79b   :  { %v1869_v16 = vmul.f32 %v3394_v33, %v3392_v17  ;;  %v3396_v19 = vpop.eup %3395 }
 0x79d   :  { %3397 = vtanh.f32 %v1869_v16 }
 0x7a7   :  { %v3398_v21 = vpop.eup %3397 }
 0x7a8   :  { %v1871_v37 = vmul.f32 %v3398_v21, %v3396_v19 }
 0x7aa   :  { %1872 = vst [vmem:[#allocation3] sm:$0x40] %v1871_v37  ;;  %v1922_v39 = vrot.slane %v1871_v37, 6 }
 0x7ac   :  { %1989 = vmatmul.mubr.f32.vlgmr.msra.gmra.mrb[16].mxu0 %v1922_v39  ;;  %2737 = vmatmul.mubr.f32.vlgmr.msra.gmra.mrb[16].mxu1 %v1922_v39 }
 0x7ad   :  { %2771 = vmatprep.mubr.msk.f32.mxu0 %vm3558_vm0, %v3557_v8  ;;  %3280 = vmatpush3.bf16.msra.mxu0 %v3279_v42  ;;  %v2102_v8 = vld [vmem:[#allocation12 + $0x38] sm:$0xff] }
 0x7ae   :  { %3281 = vmatprep.subr.bf16.mxu0 %v3556_v3  ;;  %v3288_v60 = vpack.c.bf16 %v2102_v8, %v2101_v57 }
 0x7b1   :  { %3283 = vmatpush3.bf16.msra.mxu0 %v3282_v47 }
 0x7b2   :  { %3284 = vmatprep.subr.bf16.mxu0 %v3556_v3 }
 0x7b5   :  { %3286 = vmatpush3.bf16.msra.mxu0 %v3285_v55 }
 0x7b6   :  { %3287 = vmatprep.subr.bf16.mxu0 %v3556_v3 }
 0x7b9   :  { %3289 = vmatpush3.bf16.msra.mxu0 %v3288_v60 }
 0x7ba   :  { %3290 = vmatprep.subr.bf16.mxu0 %v3556_v3 }
 0x7bd   :  { %3292 = vmatpush3.bf16.msra.mxu0 %v3291_v31 }
 0x7be   :  { %3293 = vmatprep.subr.bf16.mxu0 %v3556_v3 }
 0x7c1   :  { %3295 = vmatpush3.bf16.msra.mxu0 %v3294_v41 }
 0x7c2   :  { %3296 = vmatprep.subr.bf16.mxu0 %v3556_v3 }
 0x7c5   :  { %3298 = vmatpush3.bf16.msra.mxu0 %v3297_v58 }
 0x7c6   :  { %3299 = vmatprep.subr.bf16.mxu0 %v3556_v3 }
 0x7c9   :  { %3301 = vmatpush3.bf16.msra.mxu0 %v3300_v5 }
 0x87f   :  { %v1990_v7 = vpop.f32.mrb[16].mxu0  ;;  %v2061_v14 = vpop.f32.mrb[16].mxu1 }
 0x880   :  { %v2068_v11 = vrot.slane %v1990_v7, 1  ;;  %v1992_v23 = vpop.f32.mrb[17].mxu0  ;;  %v2738_v25 = vpop.f32.mrb[17].mxu1  ;;  %v2070_v35 = vrot.slane %v2061_v14, 1 }
 0x881   :  { %v2069_v13 = vrot.slane %v1992_v23, 1 }
 0x882   :  { %v2074_v27 = vadd.f32 %v2068_v11, %v3834_v53  ;;  %v2076_v9 = vadd.f32 %v2070_v35, %v3837_v1 }
 0x883   :  { %v2075_v22 = vadd.f32 %v2069_v13, %v3840_v10  ;;  %v2253_v10 = vld [vmem:[%s4155_s7] ss:$0 sm:$0xff] }
 0x884   :  { %v2251_v6 = vmul.f32 -1.442695, %v2074_v27  ;;  %v2252_v12 = vmul.f32 -1.442695, %v2076_v9 }
 0x886   :  { %3399 = vpow2.f32 %v2251_v6 }
 0x887   :  { %3401 = vpow2.f32 %v2252_v12 }
 0x888   :  { %3403 = vtanh.f32 %v2075_v22 }
 0x890   :  { %v3400_v28 = vpop.eup %3399 }
 0x891   :  { %v2080_v3 = vadd.f32 1.0, %v3400_v28  ;;  %v3402_v18 = vpop.eup %3401 }
 0x892   :  { %v2087_v20 = vadd.f32 1.0, %v3402_v18  ;;  %v3404_v26 = vpop.eup %3403 }
 0x893   :  { %3405 = vrcp.f32 %v2080_v3 }
 0x894   :  { %3407 = vrcp.f32 %v2087_v20 }
 0x89d   :  { %v3406_v36 = vpop.eup %3405 }
 0x89e   :  { %v2090_v38 = vmul.f32 %v3406_v36, %v3404_v26  ;;  %v3408_v53 = vpop.eup %3407 }
 0x8a0   :  { %3409 = vtanh.f32 %v2090_v38 }
 0x8aa   :  { %v3410_v44 = vpop.eup %3409 }
 0x8ab   :  { %v2092_v48 = vmul.f32 %v3410_v44, %v3408_v53 }
 0x8ad   :  { %2093 = vst [vmem:[#allocation3] sm:$0x80] %v2092_v48  ;;  %2199 = vst [vmem:[%s4157_s9 - $0x7] sm:$0x80] %v2092_v48  ;;  %s3559_s9 = smov [#allocation14]  }
 0x8ae   :  { %s2206_s19 = sshll.u32 %s3559_s9, 4  ;;  %s2207_s19 = int_to_ptr.vmem [resolvable:$true] %s2206_s19 }
 0x8af   :  { %s3515_s7 = scalar_lea.vmem %s2207_s19, 128  ;;  %p3520_p10 = scmp.lt.s32.totalorder %s2207_s19, %s2207_s19 }
 0x8b0   :  { %p3516_p9 = scmp.ne.s32.totalorder %s2207_s19, %s3515_s7  ;;  %p3521_p11 = scmp.lt.s32.totalorder %s3515_s7, %s3515_s7 }
 0x8b2   :  { %p3522_p12 = por %p3521_p11, %p3520_p10 }
 0x8b4   :  { %v2094_v1 = vld [vmem:[#allocation3] sm:$0xff]  ;;  %p3523_p13 = pnand %p3522_p12, %p3516_p9 }
 0x8b5   :  { %2772 = vmatmul.mubr.f32.vlgmr.msra.gmra.mrb[18].mxu0 %v2094_v1 }
 0x988   :  { %v2184_v51 = vpop.f32.mrb[18].mxu0 }
 0x989   :  { %v2185_v56 = vadd.f32 %v2253_v10, %v2184_v51  ;;  %v2773_v63 = vpop.f32.mrb[19].mxu0 }
 0x98b   :  { %2188 = vmax.xlane.f32.xlu0 %v2185_v56 }
 0xa18   :  { %v2189_v2 = vpop.xlane.xlu0 %2188 }
 0xa19   :  { %v2190_v34 = vsub.f32 %v2185_v56, %v2189_v2 }
 0xa1b   :  { %v2191_v49 = vmul.f32 1.442695, %v2190_v34 }
 0xa1d   :  { %3411 = vpow2.f32 %v2191_v49 }
 0xa27   :  { %v3412_v52 = vpop.eup %3411 }
 0xa28   :  { %2193 = vadd.xlane.f32.xlu0 %v3412_v52 }
 0xab5   :  { %v2194_v4 = vpop.xlane.xlu0 %2193 }
 0xab6   :  { %3413 = vlog2.f32 %v2194_v4 }
 0xac0   :  { %v3414_v15 = vpop.eup %3413 }
 0xac1   :  { %v2196_v17 = vmul.f32 0.6931472, %v3414_v15 }
 0xac3   :  { %v2197_v33 = vsub.f32 %v2190_v34, %v2196_v17 }
 0xac5   :  { %2198 = vst [vmem:[#allocation14] sm:$0xff] %v2197_v33 }
 0xac6   :  { %3526 = shalt.err (!%p3523_p13)
}
 0xac7   :  { %s3527_s0 = scalar_lea.hbm %s4156_s8, 128 }
 0xac8   :  { %p3528_p0 = scmp.ne.s32.totalorder %s4156_s8, %s3527_s0  ;;  %p3531_p1 = scmp.lt.u32.totalorder %s3527_s0, %s4156_s8 }
 0xaca   :  { %p3533_p2 = pnand %p3531_p1, %p3528_p0 }
 0xacc   :  { %3536 = shalt.err (!%p3533_p2)
}
 0xacd   :  { %2209 = dma.vmem_to_hbm [thread:$0]  %s2207_s19, 128, %s4156_s8, [#allocation6]  }
 0xace   :  { %3545 = dma.done.wait [#allocation6], 128  }
 0xacf   :  { %3546 = vsyncadd [#allocation6], 4294967168 }
 0xad0   :  { %2217 = vsyncpa [#allocation5], 1 }
 0xad1   :  { %2218 = vsyncpa [#allocation10], 1 }
 0xad2   :  { %2219 = vsyncpa [#allocation13], 1 }
 0xad3   :  { %2220 = vsyncpa [#allocation6], 1 }
 0xad4   :  { %2221 = vsyncpa [#allocation7], 1 }

</bundles_post_ra>
